<compile_context>
chip_gen: v5e
topology: v5e:2x2
jax: 0.10.0
libtpu: 0.0.40
codegen_flags: <defaults>
</compile_context>

<pallas_src>
import functools

import jax
import jax.numpy as jnp
from jax.experimental import pallas as pl
from jax.experimental.pallas import tpu as pltpu


# ----------------------------- kernel helpers ------------------------------ #

def _layernorm(x, w, b, eps=1e-5):
    # F.layer_norm semantics: biased variance, eps inside the sqrt.
    mu = jnp.mean(x, axis=-1, keepdims=True)
    var = jnp.mean((x - mu) ** 2, axis=-1, keepdims=True)
    return (x - mu) * jax.lax.rsqrt(var + eps) * w + b


def _gelu_exact(x):
    # nn.GELU() default: 0.5 * x * (1 + erf(x / sqrt(2)))
    return 0.5 * x * (1.0 + jax.lax.erf(x * (1.0 / (2.0 ** 0.5))))


# --------------------------------- kernel ---------------------------------- #

def transformer_kernel(x_ref, wq_ref, bq_ref, wk_ref, bk_ref, wv_ref, bv_ref,
                       ln1w_ref, ln1b_ref, wfc1_ref, bfc1_ref, wfc2_ref, bfc2_ref,
                       ln2w_ref, ln2b_ref, o_ref, state_ref, *fallback_scratch,
                       n_head, use_einshape):
    layer = pl.program_id(1)
    Bblk, T, C = x_ref.shape
    H = n_head
    hd = C // H
    M = Bblk * T

    # Layer 0: load this batch block's input into the resident VMEM state (flattened rows).
    @pl.when(layer == 0)
    def _():
        state_ref[...] = x_ref[...].reshape(M, C).astype(jnp.float32)

    x = state_ref[...]                       # (M, C) f32 running activation
    xb = x.astype(jnp.bfloat16)              # bf16 operand for the weight matmuls

    # ---- MultiHeadSelfAttention (no causal mask / output proj — as in the module) ----
    # 1/sqrt(hd) is pre-folded into wq/bq in the wrapper.
    q = jnp.dot(xb, wq_ref[0], preferred_element_type=jnp.float32) + bq_ref[0]
    k = jnp.dot(xb, wk_ref[0], preferred_element_type=jnp.float32) + bk_ref[0]
    v = jnp.dot(xb, wv_ref[0], preferred_element_type=jnp.float32) + bv_ref[0]

    if use_einshape:
        # Layout-aware head regroup: (M, C) -> (M, H, hd) -> (H, M, hd) -> (H*Bblk, T, hd).
        # Only contiguous reshapes + one einshape; no lane-dim slicing or concatenation.
        def split_heads(t):
            t = t.astype(jnp.bfloat16).reshape(M, H, hd)
            return pltpu.einshape("mhd->hmd", t).reshape(H * Bblk, T, hd)
    else:
        # Fallback (verified lowering): per-head lane slices + leading-axis concat.
        def split_heads(t):
            t = t.astype(jnp.bfloat16)
            return jnp.concatenate(
                [t[:, h * hd:(h + 1) * hd].reshape(Bblk, T, hd) for h in range(H)],
                axis=0)

    q3, k3, v3 = split_heads(q), split_heads(k), split_heads(v)

    # Head-batched attention (batch dim = H*Bblk), bf16 MXU inputs, f32 accumulation.
    s = jnp.einsum('bqd,bkd->bqk', q3, k3, preferred_element_type=jnp.float32)
    s = s - jnp.max(s, axis=-1, keepdims=True)
    p = jnp.exp(s)
    denom = jnp.sum(p, axis=-1, keepdims=True)
    o3 = jnp.einsum('bqk,bkd->bqd', p.astype(jnp.bfloat16), v3,
                    preferred_element_type=jnp.float32)
    o3 = o3 * pl.reciprocal(denom, approx=True)   # normalize after PV (EUP reciprocal)

    if use_einshape:
        # Inverse regroup: (H*Bblk, T, hd) -> (H, M, hd) -> (M, H, hd) -> (M, C).
        y = pltpu.einshape("hmd->mhd", o3.reshape(H, M, hd)).reshape(M, C)
    else:
        y_ref = fallback_scratch[0]
        for h in range(H):
            y_ref[:, h * hd:(h + 1) * hd] = o3[h * Bblk:(h + 1) * Bblk].reshape(M, hd)
        y = y_ref[...]

    # ---- x = ln_1(x + attn(x)) ----
    x1 = _layernorm(x + y, ln1w_ref[0], ln1b_ref[0])

    # ---- MLP: fc1 -> GELU(exact) -> fc2 (bf16 inputs, f32 accumulation) ----
    h1 = jnp.dot(x1.astype(jnp.bfloat16), wfc1_ref[0],
                 preferred_element_type=jnp.float32) + bfc1_ref[0]
    h1 = _gelu_exact(h1)
    m = jnp.dot(h1.astype(jnp.bfloat16), wfc2_ref[0],
                preferred_element_type=jnp.float32) + bfc2_ref[0]

    # ---- x = ln_2(x + mlp(x)) ----
    x2 = _layernorm(x1 + m, ln2w_ref[0], ln2b_ref[0])
    state_ref[...] = x2

    @pl.when(layer == pl.num_programs(1) - 1)
    def _():
        o_ref[...] = x2.reshape(Bblk, T, C).astype(o_ref.dtype)


# -------------------------------- wrapper ----------------------------------- #

def transformer_forward(x, params, n_head, block_b=None):
    B, T, C = x.shape
    L = params["wqkv"].shape[0]
    assert C % n_head == 0, "C must be divisible by n_head"
    assert T % 8 == 0, "T must be a multiple of the f32 sublane tile (8)"
    hd = C // n_head

    # Batch-block size: prefer >= 2 batch blocks so the "parallel" axis shards across
    # v7x's two TensorCores; among those, prefer block_b*T >= 512 to fill the MXU M dim.
    if block_b is None:
        divisors = [d for d in range(1, B + 1) if B % d == 0]
        cand = [d for d in divisors if B // d >= 2] or divisors
        big = [d for d in cand if d * T >= 512]
        block_b = min(big) if big else max(cand)
    assert B % block_b == 0, "B must be divisible by block_b"
    nb = B // block_b
    M = block_b * T

    # Fold the 1/sqrt(hd) attention scale into wq/bq once (free at prep time), split the
    # fused qkv weight into lane-aligned per-projection weights, cast matmul weights to
    # bf16 (halves weight HBM traffic and the double-buffered weight VMEM footprint).
    scale = 1.0 / (hd ** 0.5)
    wq, wk, wv = jnp.split(params["wqkv"], 3, axis=-1)
    bq, bk, bv = jnp.split(params["bqkv"], 3, axis=-1)
    wq = (wq * scale).astype(jnp.bfloat16)
    bq = bq * scale
    wk = wk.astype(jnp.bfloat16)
    wv = wv.astype(jnp.bfloat16)
    wfc1 = params["wfc1"].astype(jnp.bfloat16)
    wfc2 = params["wfc2"].astype(jnp.bfloat16)

    # --- generation-aware VMEM budgeting ---
    try:
        vmem_cap = int(pltpu.get_tpu_info().vmem_capacity_bytes)
    except Exception:
        vmem_cap = 64 * 1024 * 1024        # conservative default (v7x per-TensorCore)
    w_bytes = (3 * C * C + 8 * C * C) * 2                   # bf16 qkv + fc1 + fc2 per layer
    io_bytes = 2 * M * C * 4                                 # x block + out block (f32)
    scratch_bytes = M * C * 4                                # resident activation state
    interm_bytes = (8 * M * C                                # q/k/v/y + residual temps (f32)
                    + 2 * block_b * n_head * T * T           # scores + probs (f32)
                    + 4 * M * C) * 4                         # MLP hidden (f32)
    footprint = 2 * (w_bytes + io_bytes) + scratch_bytes + interm_bytes
    vmem_limit = int(min(max(footprint * 3 // 2, 32 * 1024 * 1024),
                         vmem_cap * 85 // 100))

    # Single-buffer the two big fc weights if double-buffering them alone would eat more
    # than a quarter of physical VMEM (matters at realistic C on v7x's 64 MiB).
    fc_mode = None
    if 2 * (8 * C * C) * 2 > vmem_cap // 4:
        fc_mode = pl.Buffered(1)

    xmap = lambda i, l: (i, 0, 0)   # activation / output block follows the batch-block index
    wmap = lambda i, l: (l, 0, 0)   # weights follow the layer index

    def fc_spec(shape):
        if fc_mode is not None:
            return pl.BlockSpec(shape, wmap, pipeline_mode=fc_mode)
        return pl.BlockSpec(shape, wmap)

    def build(use_einshape):
        scratch = [pltpu.VMEM((M, C), jnp.float32)]          # resident activation state
        if not use_einshape:
            scratch.append(pltpu.VMEM((M, C), jnp.float32))  # head-output staging (fallback)
        grid_spec = pltpu.PrefetchScalarGridSpec(
            num_scalar_prefetch=0,
            grid=(nb, L),
            in_specs=[
                pl.BlockSpec((block_b, T, C), xmap),   # x
                pl.BlockSpec((1, C, C), wmap),         # wq (bf16, scale folded)
                pl.BlockSpec((1, 1, C), wmap),         # bq (scale folded)
                pl.BlockSpec((1, C, C), wmap),         # wk (bf16)
                pl.BlockSpec((1, 1, C), wmap),         # bk
                pl.BlockSpec((1, C, C), wmap),         # wv (bf16)
                pl.BlockSpec((1, 1, C), wmap),         # bv
                pl.BlockSpec((1, 1, C), wmap),         # ln_1 weight
                pl.BlockSpec((1, 1, C), wmap),         # ln_1 bias
                fc_spec((1, C, 4 * C)),                # fc1 weight (bf16)
                pl.BlockSpec((1, 1, 4 * C), wmap),     # fc1 bias
                fc_spec((1, 4 * C, C)),                # fc2 weight (bf16)
                pl.BlockSpec((1, 1, C), wmap),         # fc2 bias
                pl.BlockSpec((1, 1, C), wmap),         # ln_2 weight
                pl.BlockSpec((1, 1, C), wmap),         # ln_2 bias
            ],
            out_specs=pl.BlockSpec((block_b, T, C), xmap),
            scratch_shapes=scratch,
        )
        return pl.pallas_call(
            functools.partial(transformer_kernel, n_head=n_head,
                              use_einshape=use_einshape),
            out_shape=jax.ShapeDtypeStruct((B, T, C), x.dtype),
            grid_spec=grid_spec,
            compiler_params=pltpu.CompilerParams(
                dimension_semantics=("parallel", "arbitrary"),
                vmem_limit_bytes=vmem_limit),
        )

    args = (x, wq, bq, wk, bk, wv, bv,
            params["ln1w"], params["ln1b"], wfc1, params["bfc1"],
            wfc2, params["bfc2"], params["ln2w"], params["ln2b"])
    try:
        return build(use_einshape=True)(*args)
    except Exception:
        # TODO(synk): einshape head regroup rejected by this Mosaic build; fall back to the
        # lane-sliced per-head regroup (same numerics, slower store path).
        return build(use_einshape=False)(*args)


# ------------------------- deterministic parameters ------------------------- #

def init_params(key, n_layer, n_embd):
    C = n_embd
    k_qkv, k_fc1, k_fc2 = jax.random.split(key, 3)

    def lin(k, shape, fan_in):  # PyTorch Linear default: U(-1/sqrt(fan_in), +)
        bound = 1.0 / (fan_in ** 0.5)
        return jax.random.uniform(k, shape, jnp.float32, -bound, bound)

    return {
        "wqkv": lin(k_qkv, (n_layer, C, 3 * C), C),
        "bqkv": lin(jax.random.fold_in(k_qkv, 1), (n_layer, 1, 3 * C), C),
        "ln1w": jnp.ones((n_layer, 1, C), jnp.float32),
        "ln1b": jnp.zeros((n_layer, 1, C), jnp.float32),
        "wfc1": lin(k_fc1, (n_layer, C, 4 * C), C),
        "bfc1": lin(jax.random.fold_in(k_fc1, 1), (n_layer, 1, 4 * C), C),
        "wfc2": lin(k_fc2, (n_layer, 4 * C, C), 4 * C),
        "bfc2": lin(jax.random.fold_in(k_fc2, 1), (n_layer, 1, C), 4 * C),
        "ln2w": jnp.ones((n_layer, 1, C), jnp.float32),
        "ln2b": jnp.zeros((n_layer, 1, C), jnp.float32),
    }


# ---------------------------- plain-JAX reference --------------------------- #

def reference_forward(x, params, n_head):
    B, T, C = x.shape
    L = params["wqkv"].shape[0]
    hd = C // n_head
    for l in range(L):
        qkv = x @ params["wqkv"][l] + params["bqkv"][l]
        q, k, v = jnp.split(qkv, 3, axis=-1)
        q = q.reshape(B, T, n_head, hd).transpose(0, 2, 1, 3)
        k = k.reshape(B, T, n_head, hd).transpose(0, 2, 1, 3)
        v = v.reshape(B, T, n_head, hd).transpose(0, 2, 1, 3)
        attn = (q @ jnp.swapaxes(k, -1, -2)) / (hd ** 0.5)
        attn = jax.nn.softmax(attn, axis=-1)
        y = (attn @ v).transpose(0, 2, 1, 3).reshape(B, T, C)
        x = _layernorm(x + y, params["ln1w"][l, 0], params["ln1b"][l, 0])
        h = jax.nn.gelu(x @ params["wfc1"][l] + params["bfc1"][l], approximate=False)
        m = h @ params["wfc2"][l] + params["bfc2"][l]
        x = _layernorm(x + m, params["ln2w"][l, 0], params["ln2b"][l, 0])
    return x


# ----------------------------------- main ----------------------------------- #

if __name__ == "__main__":
    # config: n_embd=32, n_head=4, n_layer=2 ; input (B, T, C) = (2, 8, 32)
    B, T, C, n_head, n_layer = 2, 8, 32, 4, 2

    key = jax.random.PRNGKey(0)
    k_x, k_p = jax.random.split(key)
    x = jax.random.normal(k_x, (B, T, C), jnp.float32)
    params = init_params(k_p, n_layer, C)

    out = transformer_forward(x, params, n_head)
    out = jax.block_until_ready(out)

    ref = reference_forward(x, params, n_head)
    assert out.shape == (B, T, C) and out.dtype == jnp.float32
    # The kernel quantizes matmul inputs (weights + activations + softmax probs) to bf16
    # (native MXU path) and uses an approximate EUP reciprocal for the softmax denominator,
    # while the reference runs pure f32 — allow a small quantization headroom.
    assert jnp.allclose(out, ref, atol=2e-2, rtol=2e-2), "mismatch vs JAX reference"

    print("KERNEL_OK")
</pallas_src>

<mosaic_0001>
module attributes {stable_mosaic.version = 11 : i64} {
  func.func @transformer_kernel(%arg0: i32, %arg1: i32, %arg2: memref<1x8x32xf32, #tpu.memory_space<vmem>>, %arg3: memref<1x32x32xbf16, #tpu.memory_space<vmem>>, %arg4: memref<1x1x32xf32, #tpu.memory_space<vmem>>, %arg5: memref<1x32x32xbf16, #tpu.memory_space<vmem>>, %arg6: memref<1x1x32xf32, #tpu.memory_space<vmem>>, %arg7: memref<1x32x32xbf16, #tpu.memory_space<vmem>>, %arg8: memref<1x1x32xf32, #tpu.memory_space<vmem>>, %arg9: memref<1x1x32xf32, #tpu.memory_space<vmem>>, %arg10: memref<1x1x32xf32, #tpu.memory_space<vmem>>, %arg11: memref<1x32x128xbf16, #tpu.memory_space<vmem>>, %arg12: memref<1x1x128xf32, #tpu.memory_space<vmem>>, %arg13: memref<1x128x32xbf16, #tpu.memory_space<vmem>>, %arg14: memref<1x1x32xf32, #tpu.memory_space<vmem>>, %arg15: memref<1x1x32xf32, #tpu.memory_space<vmem>>, %arg16: memref<1x1x32xf32, #tpu.memory_space<vmem>>, %arg17: memref<1x8x32xf32, #tpu.memory_space<vmem>>, %arg18: memref<8x32xf32, #tpu.memory_space<vmem>>) attributes {dimension_semantics = [#tpu.dimension_semantics<parallel>, #tpu.dimension_semantics<arbitrary>], iteration_bounds = array<i64: 2, 2>, scalar_prefetch = 0 : i64, scratch_operands = 1 : i64, tpu.core_type = #tpu.core_type<tc>, window_params = [{transform_indices = @transform_0, window_bounds = array<i64: 1, 8, 32>}, {transform_indices = @transform_1, window_bounds = array<i64: 1, 32, 32>}, {transform_indices = @transform_2, window_bounds = array<i64: 1, 1, 32>}, {transform_indices = @transform_3, window_bounds = array<i64: 1, 32, 32>}, {transform_indices = @transform_4, window_bounds = array<i64: 1, 1, 32>}, {transform_indices = @transform_5, window_bounds = array<i64: 1, 32, 32>}, {transform_indices = @transform_6, window_bounds = array<i64: 1, 1, 32>}, {transform_indices = @transform_7, window_bounds = array<i64: 1, 1, 32>}, {transform_indices = @transform_8, window_bounds = array<i64: 1, 1, 32>}, {transform_indices = @transform_9, window_bounds = array<i64: 1, 32, 128>}, {transform_indices = @transform_10, window_bounds = array<i64: 1, 1, 128>}, {transform_indices = @transform_11, window_bounds = array<i64: 1, 128, 32>}, {transform_indices = @transform_12, window_bounds = array<i64: 1, 1, 32>}, {transform_indices = @transform_13, window_bounds = array<i64: 1, 1, 32>}, {transform_indices = @transform_14, window_bounds = array<i64: 1, 1, 32>}, {transform_indices = @transform_15, window_bounds = array<i64: 1, 8, 32>}]} {
    %c0_i32 = arith.constant 0 : i32
    %0 = arith.cmpi eq, %arg1, %c0_i32 : i32
    %1 = arith.extui %0 : i1 to i32
    %c0_i32_0 = arith.constant 0 : i32
    %2 = arith.cmpi ne, %1, %c0_i32_0 : i32
    scf.if %2 {
      %c0_68 = arith.constant 0 : index
      %c0_69 = arith.constant 0 : index
      %c0_70 = arith.constant 0 : index
      %132 = vector.load %arg2[%c0_68, %c0_69, %c0_70] : memref<1x8x32xf32, #tpu.memory_space<vmem>>, vector<1x8x32xf32>
      %133 = vector.shape_cast %132 : vector<1x8x32xf32> to vector<8x32xf32>
      %c0_71 = arith.constant 0 : index
      %c0_72 = arith.constant 0 : index
      %134 = vector.load %arg18[%c0_71, %c0_72] : memref<8x32xf32, #tpu.memory_space<vmem>>, vector<8x32xf32>
      tpu.vector_store %arg18[%c0_71, %c0_72], %133 {strides = array<i32>} : memref<8x32xf32, #tpu.memory_space<vmem>>, vector<8x32xf32>,
    } else {
    }
    %c0 = arith.constant 0 : index
    %c0_1 = arith.constant 0 : index
    %3 = vector.load %arg18[%c0, %c0_1] : memref<8x32xf32, #tpu.memory_space<vmem>>, vector<8x32xf32>
    %4 = arith.truncf %3 : vector<8x32xf32> to vector<8x32xbf16>
    %c0_2 = arith.constant 0 : index
    %c0_3 = arith.constant 0 : index
    %c0_4 = arith.constant 0 : index
    %5 = vector.load %arg3[%c0_2, %c0_3, %c0_4] : memref<1x32x32xbf16, #tpu.memory_space<vmem>>, vector<1x32x32xbf16>
    %6 = vector.shape_cast %5 : vector<1x32x32xbf16> to vector<32x32xbf16>
    %cst = arith.constant dense<0.000000e+00> : vector<8x32xf32>
    %7 = tpu.matmul %4, %6, %cst {dimension_numbers = #tpu.dot_dimension_numbers<[1], [0], [0], [1], [0, 0, 1, 1], [], []>} : vector<8x32xbf16>, vector<32x32xbf16>, vector<8x32xf32> -> vector<8x32xf32>
    %c0_5 = arith.constant 0 : index
    %c0_6 = arith.constant 0 : index
    %c0_7 = arith.constant 0 : index
    %8 = vector.load %arg4[%c0_5, %c0_6, %c0_7] : memref<1x1x32xf32, #tpu.memory_space<vmem>>, vector<1x1x32xf32>
    %9 = vector.shape_cast %8 : vector<1x1x32xf32> to vector<1x32xf32>
    %10 = vector.broadcast %9 : vector<1x32xf32> to vector<8x32xf32>
    %11 = arith.addf %7, %10 : vector<8x32xf32>
    %c0_8 = arith.constant 0 : index
    %c0_9 = arith.constant 0 : index
    %c0_10 = arith.constant 0 : index
    %12 = vector.load %arg5[%c0_8, %c0_9, %c0_10] : memref<1x32x32xbf16, #tpu.memory_space<vmem>>, vector<1x32x32xbf16>
    %13 = vector.shape_cast %12 : vector<1x32x32xbf16> to vector<32x32xbf16>
    %cst_11 = arith.constant dense<0.000000e+00> : vector<8x32xf32>
    %14 = tpu.matmul %4, %13, %cst_11 {dimension_numbers = #tpu.dot_dimension_numbers<[1], [0], [0], [1], [0, 0, 1, 1], [], []>} : vector<8x32xbf16>, vector<32x32xbf16>, vector<8x32xf32> -> vector<8x32xf32>
    %c0_12 = arith.constant 0 : index
    %c0_13 = arith.constant 0 : index
    %c0_14 = arith.constant 0 : index
    %15 = vector.load %arg6[%c0_12, %c0_13, %c0_14] : memref<1x1x32xf32, #tpu.memory_space<vmem>>, vector<1x1x32xf32>
    %16 = vector.shape_cast %15 : vector<1x1x32xf32> to vector<1x32xf32>
    %17 = vector.broadcast %16 : vector<1x32xf32> to vector<8x32xf32>
    %18 = arith.addf %14, %17 : vector<8x32xf32>
    %c0_15 = arith.constant 0 : index
    %c0_16 = arith.constant 0 : index
    %c0_17 = arith.constant 0 : index
    %19 = vector.load %arg7[%c0_15, %c0_16, %c0_17] : memref<1x32x32xbf16, #tpu.memory_space<vmem>>, vector<1x32x32xbf16>
    %20 = vector.shape_cast %19 : vector<1x32x32xbf16> to vector<32x32xbf16>
    %cst_18 = arith.constant dense<0.000000e+00> : vector<8x32xf32>
    %21 = tpu.matmul %4, %20, %cst_18 {dimension_numbers = #tpu.dot_dimension_numbers<[1], [0], [0], [1], [0, 0, 1, 1], [], []>} : vector<8x32xbf16>, vector<32x32xbf16>, vector<8x32xf32> -> vector<8x32xf32>
    %c0_19 = arith.constant 0 : index
    %c0_20 = arith.constant 0 : index
    %c0_21 = arith.constant 0 : index
    %22 = vector.load %arg8[%c0_19, %c0_20, %c0_21] : memref<1x1x32xf32, #tpu.memory_space<vmem>>, vector<1x1x32xf32>
    %23 = vector.shape_cast %22 : vector<1x1x32xf32> to vector<1x32xf32>
    %24 = vector.broadcast %23 : vector<1x32xf32> to vector<8x32xf32>
    %25 = arith.addf %21, %24 : vector<8x32xf32>
    %26 = arith.truncf %11 : vector<8x32xf32> to vector<8x32xbf16>
    %27 = vector.shape_cast %26 : vector<8x32xbf16> to vector<8x4x8xbf16>
    %28 = tpu.transpose %27, [1, 0, 2] : vector<8x4x8xbf16> -> vector<4x8x8xbf16>
    %29 = arith.truncf %18 : vector<8x32xf32> to vector<8x32xbf16>
    %30 = vector.shape_cast %29 : vector<8x32xbf16> to vector<8x4x8xbf16>
    %31 = tpu.transpose %30, [1, 0, 2] : vector<8x4x8xbf16> -> vector<4x8x8xbf16>
    %32 = arith.truncf %25 : vector<8x32xf32> to vector<8x32xbf16>
    %33 = vector.shape_cast %32 : vector<8x32xbf16> to vector<8x4x8xbf16>
    %34 = tpu.transpose %33, [1, 0, 2] : vector<8x4x8xbf16> -> vector<4x8x8xbf16>
    "tpu.trace_start"() <{level = 10 : i32, message = "bqd,bkd->bqk"}> : () -> ()
    %cst_22 = arith.constant dense<0.000000e+00> : vector<4x8x8xf32>
    %35 = tpu.matmul %28, %31, %cst_22 {dimension_numbers = #tpu.dot_dimension_numbers<[2], [2], [1], [1], [0, 0, 0, 1, 1, 1], [0], [0]>} : vector<4x8x8xbf16>, vector<4x8x8xbf16>, vector<4x8x8xf32> -> vector<4x8x8xf32>
    "tpu.trace_stop"() : () -> ()
    %cst_23 = arith.constant dense<0xFF800000> : vector<4x8xf32>
    %36 = vector.multi_reduction <maximumf>, %35, %cst_23 [2] : vector<4x8x8xf32> to vector<4x8xf32>
    %37 = vector.shape_cast %36 : vector<4x8xf32> to vector<4x8x1xf32>
    %38 = vector.broadcast %37 : vector<4x8x1xf32> to vector<4x8x8xf32>
    %39 = arith.subf %35, %38 : vector<4x8x8xf32>
    %40 = math.exp %39 : vector<4x8x8xf32>
    %cst_24 = arith.constant dense<0.000000e+00> : vector<4x8xf32>
    %41 = vector.multi_reduction <add>, %40, %cst_24 [2] : vector<4x8x8xf32> to vector<4x8xf32>
    %42 = vector.shape_cast %41 : vector<4x8xf32> to vector<4x8x1xf32>
    %43 = arith.truncf %40 : vector<4x8x8xf32> to vector<4x8x8xbf16>
    "tpu.trace_start"() <{level = 10 : i32, message = "bqk,bkd->bqd"}> : () -> ()
    %cst_25 = arith.constant dense<0.000000e+00> : vector<4x8x8xf32>
    %44 = tpu.matmul %43, %34, %cst_25 {dimension_numbers = #tpu.dot_dimension_numbers<[2], [1], [1], [2], [0, 0, 0, 1, 1, 2], [0], [0]>} : vector<4x8x8xbf16>, vector<4x8x8xbf16>, vector<4x8x8xf32> -> vector<4x8x8xf32>
    "tpu.trace_stop"() : () -> ()
    %45 = tpu.reciprocal %42 {approx = true} : vector<4x8x1xf32> -> vector<4x8x1xf32>
    %46 = vector.broadcast %45 : vector<4x8x1xf32> to vector<4x8x8xf32>
    %47 = arith.mulf %44, %46 : vector<4x8x8xf32>
    %48 = tpu.transpose %47, [1, 0, 2] : vector<4x8x8xf32> -> vector<8x4x8xf32>
    %49 = vector.shape_cast %48 : vector<8x4x8xf32> to vector<8x32xf32>
    %50 = arith.addf %3, %49 : vector<8x32xf32>
    %c0_26 = arith.constant 0 : index
    %c0_27 = arith.constant 0 : index
    %c0_28 = arith.constant 0 : index
    %51 = vector.load %arg9[%c0_26, %c0_27, %c0_28] : memref<1x1x32xf32, #tpu.memory_space<vmem>>, vector<1x1x32xf32>
    %52 = vector.shape_cast %51 : vector<1x1x32xf32> to vector<1x32xf32>
    %c0_29 = arith.constant 0 : index
    %c0_30 = arith.constant 0 : index
    %c0_31 = arith.constant 0 : index
    %53 = vector.load %arg10[%c0_29, %c0_30, %c0_31] : memref<1x1x32xf32, #tpu.memory_space<vmem>>, vector<1x1x32xf32>
    %54 = vector.shape_cast %53 : vector<1x1x32xf32> to vector<1x32xf32>
    %cst_32 = arith.constant dense<0.000000e+00> : vector<8xf32>
    %55 = vector.multi_reduction <add>, %50, %cst_32 [1] : vector<8x32xf32> to vector<8xf32>
    %56 = vector.shape_cast %55 : vector<8xf32> to vector<8x1xf32>
    %cst_33 = arith.constant 3.200000e+01 : f32
    %57 = vector.broadcast %cst_33 : f32 to vector<8x1xf32>
    %58 = arith.divf %56, %57 : vector<8x1xf32>
    %59 = vector.broadcast %58 : vector<8x1xf32> to vector<8x32xf32>
    %60 = arith.subf %50, %59 : vector<8x32xf32>
    %61 = arith.mulf %60, %60 : vector<8x32xf32>
    %cst_34 = arith.constant dense<0.000000e+00> : vector<8xf32>
    %62 = vector.multi_reduction <add>, %61, %cst_34 [1] : vector<8x32xf32> to vector<8xf32>
    %63 = vector.shape_cast %62 : vector<8xf32> to vector<8x1xf32>
    %cst_35 = arith.constant 3.200000e+01 : f32
    %64 = vector.broadcast %cst_35 : f32 to vector<8x1xf32>
    %65 = arith.divf %63, %64 : vector<8x1xf32>
    %66 = vector.broadcast %58 : vector<8x1xf32> to vector<8x32xf32>
    %67 = arith.subf %50, %66 : vector<8x32xf32>
    %cst_36 = arith.constant 9.99999974E-6 : f32
    %68 = vector.broadcast %cst_36 : f32 to vector<8x1xf32>
    %69 = arith.addf %65, %68 : vector<8x1xf32>
    %70 = math.rsqrt %69 : vector<8x1xf32>
    %71 = vector.broadcast %70 : vector<8x1xf32> to vector<8x32xf32>
    %72 = arith.mulf %67, %71 : vector<8x32xf32>
    %73 = vector.broadcast %52 : vector<1x32xf32> to vector<8x32xf32>
    %74 = arith.mulf %72, %73 : vector<8x32xf32>
    %75 = vector.broadcast %54 : vector<1x32xf32> to vector<8x32xf32>
    %76 = arith.addf %74, %75 : vector<8x32xf32>
    %77 = arith.truncf %76 : vector<8x32xf32> to vector<8x32xbf16>
    %c0_37 = arith.constant 0 : index
    %c0_38 = arith.constant 0 : index
    %c0_39 = arith.constant 0 : index
    %78 = vector.load %arg11[%c0_37, %c0_38, %c0_39] : memref<1x32x128xbf16, #tpu.memory_space<vmem>>, vector<1x32x128xbf16>
    %79 = vector.shape_cast %78 : vector<1x32x128xbf16> to vector<32x128xbf16>
    %cst_40 = arith.constant dense<0.000000e+00> : vector<8x128xf32>
    %80 = tpu.matmul %77, %79, %cst_40 {dimension_numbers = #tpu.dot_dimension_numbers<[1], [0], [0], [1], [0, 0, 1, 1], [], []>} : vector<8x32xbf16>, vector<32x128xbf16>, vector<8x128xf32> -> vector<8x128xf32>
    %c0_41 = arith.constant 0 : index
    %c0_42 = arith.constant 0 : index
    %c0_43 = arith.constant 0 : index
    %81 = vector.load %arg12[%c0_41, %c0_42, %c0_43] : memref<1x1x128xf32, #tpu.memory_space<vmem>>, vector<1x1x128xf32>
    %82 = vector.shape_cast %81 : vector<1x1x128xf32> to vector<1x128xf32>
    %83 = vector.broadcast %82 : vector<1x128xf32> to vector<8x128xf32>
    %84 = arith.addf %80, %83 : vector<8x128xf32>
    %cst_44 = arith.constant 5.000000e-01 : f32
    %85 = vector.broadcast %cst_44 : f32 to vector<8x128xf32>
    %86 = arith.mulf %85, %84 : vector<8x128xf32>
    %cst_45 = arith.constant 0.707106769 : f32
    %87 = vector.broadcast %cst_45 : f32 to vector<8x128xf32>
    %88 = arith.mulf %84, %87 : vector<8x128xf32>
    %89 = math.erf %88 : vector<8x128xf32>
    %cst_46 = arith.constant 1.000000e+00 : f32
    %90 = vector.broadcast %cst_46 : f32 to vector<8x128xf32>
    %91 = arith.addf %90, %89 : vector<8x128xf32>
    %92 = arith.mulf %86, %91 : vector<8x128xf32>
    %93 = arith.truncf %92 : vector<8x128xf32> to vector<8x128xbf16>
    %c0_47 = arith.constant 0 : index
    %c0_48 = arith.constant 0 : index
    %c0_49 = arith.constant 0 : index
    %94 = vector.load %arg13[%c0_47, %c0_48, %c0_49] : memref<1x128x32xbf16, #tpu.memory_space<vmem>>, vector<1x128x32xbf16>
    %95 = vector.shape_cast %94 : vector<1x128x32xbf16> to vector<128x32xbf16>
    %cst_50 = arith.constant dense<0.000000e+00> : vector<8x32xf32>
    %96 = tpu.matmul %93, %95, %cst_50 {dimension_numbers = #tpu.dot_dimension_numbers<[1], [0], [0], [1], [0, 0, 1, 1], [], []>} : vector<8x128xbf16>, vector<128x32xbf16>, vector<8x32xf32> -> vector<8x32xf32>
    %c0_51 = arith.constant 0 : index
    %c0_52 = arith.constant 0 : index
    %c0_53 = arith.constant 0 : index
    %97 = vector.load %arg14[%c0_51, %c0_52, %c0_53] : memref<1x1x32xf32, #tpu.memory_space<vmem>>, vector<1x1x32xf32>
    %98 = vector.shape_cast %97 : vector<1x1x32xf32> to vector<1x32xf32>
    %99 = vector.broadcast %98 : vector<1x32xf32> to vector<8x32xf32>
    %100 = arith.addf %96, %99 : vector<8x32xf32>
    %101 = arith.addf %76, %100 : vector<8x32xf32>
    %c0_54 = arith.constant 0 : index
    %c0_55 = arith.constant 0 : index
    %c0_56 = arith.constant 0 : index
    %102 = vector.load %arg15[%c0_54, %c0_55, %c0_56] : memref<1x1x32xf32, #tpu.memory_space<vmem>>, vector<1x1x32xf32>
    %103 = vector.shape_cast %102 : vector<1x1x32xf32> to vector<1x32xf32>
    %c0_57 = arith.constant 0 : index
    %c0_58 = arith.constant 0 : index
    %c0_59 = arith.constant 0 : index
    %104 = vector.load %arg16[%c0_57, %c0_58, %c0_59] : memref<1x1x32xf32, #tpu.memory_space<vmem>>, vector<1x1x32xf32>
    %105 = vector.shape_cast %104 : vector<1x1x32xf32> to vector<1x32xf32>
    %cst_60 = arith.constant dense<0.000000e+00> : vector<8xf32>
    %106 = vector.multi_reduction <add>, %101, %cst_60 [1] : vector<8x32xf32> to vector<8xf32>
    %107 = vector.shape_cast %106 : vector<8xf32> to vector<8x1xf32>
    %cst_61 = arith.constant 3.200000e+01 : f32
    %108 = vector.broadcast %cst_61 : f32 to vector<8x1xf32>
    %109 = arith.divf %107, %108 : vector<8x1xf32>
    %110 = vector.broadcast %109 : vector<8x1xf32> to vector<8x32xf32>
    %111 = arith.subf %101, %110 : vector<8x32xf32>
    %112 = arith.mulf %111, %111 : vector<8x32xf32>
    %cst_62 = arith.constant dense<0.000000e+00> : vector<8xf32>
    %113 = vector.multi_reduction <add>, %112, %cst_62 [1] : vector<8x32xf32> to vector<8xf32>
    %114 = vector.shape_cast %113 : vector<8xf32> to vector<8x1xf32>
    %cst_63 = arith.constant 3.200000e+01 : f32
    %115 = vector.broadcast %cst_63 : f32 to vector<8x1xf32>
    %116 = arith.divf %114, %115 : vector<8x1xf32>
    %117 = vector.broadcast %109 : vector<8x1xf32> to vector<8x32xf32>
    %118 = arith.subf %101, %117 : vector<8x32xf32>
    %cst_64 = arith.constant 9.99999974E-6 : f32
    %119 = vector.broadcast %cst_64 : f32 to vector<8x1xf32>
    %120 = arith.addf %116, %119 : vector<8x1xf32>
    %121 = math.rsqrt %120 : vector<8x1xf32>
    %122 = vector.broadcast %121 : vector<8x1xf32> to vector<8x32xf32>
    %123 = arith.mulf %118, %122 : vector<8x32xf32>
    %124 = vector.broadcast %103 : vector<1x32xf32> to vector<8x32xf32>
    %125 = arith.mulf %123, %124 : vector<8x32xf32>
    %126 = vector.broadcast %105 : vector<1x32xf32> to vector<8x32xf32>
    %127 = arith.addf %125, %126 : vector<8x32xf32>
    %c0_65 = arith.constant 0 : index
    %c0_66 = arith.constant 0 : index
    %128 = vector.load %arg18[%c0_65, %c0_66] : memref<8x32xf32, #tpu.memory_space<vmem>>, vector<8x32xf32>
    tpu.vector_store %arg18[%c0_65, %c0_66], %127 {strides = array<i32>} : memref<8x32xf32, #tpu.memory_space<vmem>>, vector<8x32xf32>,
    %c1_i32 = arith.constant 1 : i32
    %129 = arith.cmpi eq, %arg1, %c1_i32 : i32
    %130 = arith.extui %129 : i1 to i32
    %c0_i32_67 = arith.constant 0 : i32
    %131 = arith.cmpi ne, %130, %c0_i32_67 : i32
    scf.if %131 {
      %132 = vector.shape_cast %127 : vector<8x32xf32> to vector<1x8x32xf32>
      %c0_68 = arith.constant 0 : index
      %c0_69 = arith.constant 0 : index
      %c0_70 = arith.constant 0 : index
      %133 = vector.load %arg17[%c0_68, %c0_69, %c0_70] : memref<1x8x32xf32, #tpu.memory_space<vmem>>, vector<1x8x32xf32>
      tpu.vector_store %arg17[%c0_68, %c0_69, %c0_70], %132 {strides = array<i32>} : memref<1x8x32xf32, #tpu.memory_space<vmem>>, vector<1x8x32xf32>,
    } else {
    }
    return
  }
  func.func @transform_0(%arg0: i32, %arg1: i32) -> (i32, i32, i32) {
    %c0_i32 = arith.constant 0 : i32
    %c0_i32_0 = arith.constant 0 : i32
    %c0_i32_1 = arith.constant 0 : i32
    return %arg0, %c0_i32, %c0_i32_0 : i32, i32, i32
  }
  func.func @transform_1(%arg0: i32, %arg1: i32) -> (i32, i32, i32) {
    %c0_i32 = arith.constant 0 : i32
    %c0_i32_0 = arith.constant 0 : i32
    %c0_i32_1 = arith.constant 0 : i32
    return %arg1, %c0_i32, %c0_i32_0 : i32, i32, i32
  }
  func.func @transform_2(%arg0: i32, %arg1: i32) -> (i32, i32, i32) {
    %c0_i32 = arith.constant 0 : i32
    %c0_i32_0 = arith.constant 0 : i32
    %c0_i32_1 = arith.constant 0 : i32
    return %arg1, %c0_i32, %c0_i32_0 : i32, i32, i32
  }
  func.func @transform_3(%arg0: i32, %arg1: i32) -> (i32, i32, i32) {
    %c0_i32 = arith.constant 0 : i32
    %c0_i32_0 = arith.constant 0 : i32
    %c0_i32_1 = arith.constant 0 : i32
    return %arg1, %c0_i32, %c0_i32_0 : i32, i32, i32
  }
  func.func @transform_4(%arg0: i32, %arg1: i32) -> (i32, i32, i32) {
    %c0_i32 = arith.constant 0 : i32
    %c0_i32_0 = arith.constant 0 : i32
    %c0_i32_1 = arith.constant 0 : i32
    return %arg1, %c0_i32, %c0_i32_0 : i32, i32, i32
  }
  func.func @transform_5(%arg0: i32, %arg1: i32) -> (i32, i32, i32) {
    %c0_i32 = arith.constant 0 : i32
    %c0_i32_0 = arith.constant 0 : i32
    %c0_i32_1 = arith.constant 0 : i32
    return %arg1, %c0_i32, %c0_i32_0 : i32, i32, i32
  }
  func.func @transform_6(%arg0: i32, %arg1: i32) -> (i32, i32, i32) {
    %c0_i32 = arith.constant 0 : i32
    %c0_i32_0 = arith.constant 0 : i32
    %c0_i32_1 = arith.constant 0 : i32
    return %arg1, %c0_i32, %c0_i32_0 : i32, i32, i32
  }
  func.func @transform_7(%arg0: i32, %arg1: i32) -> (i32, i32, i32) {
    %c0_i32 = arith.constant 0 : i32
    %c0_i32_0 = arith.constant 0 : i32
    %c0_i32_1 = arith.constant 0 : i32
    return %arg1, %c0_i32, %c0_i32_0 : i32, i32, i32
  }
  func.func @transform_8(%arg0: i32, %arg1: i32) -> (i32, i32, i32) {
    %c0_i32 = arith.constant 0 : i32
    %c0_i32_0 = arith.constant 0 : i32
    %c0_i32_1 = arith.constant 0 : i32
    return %arg1, %c0_i32, %c0_i32_0 : i32, i32, i32
  }
  func.func @transform_9(%arg0: i32, %arg1: i32) -> (i32, i32, i32) {
    %c0_i32 = arith.constant 0 : i32
    %c0_i32_0 = arith.constant 0 : i32
    %c0_i32_1 = arith.constant 0 : i32
    return %arg1, %c0_i32, %c0_i32_0 : i32, i32, i32
  }
  func.func @transform_10(%arg0: i32, %arg1: i32) -> (i32, i32, i32) {
    %c0_i32 = arith.constant 0 : i32
    %c0_i32_0 = arith.constant 0 : i32
    %c0_i32_1 = arith.constant 0 : i32
    return %arg1, %c0_i32, %c0_i32_0 : i32, i32, i32
  }
  func.func @transform_11(%arg0: i32, %arg1: i32) -> (i32, i32, i32) {
    %c0_i32 = arith.constant 0 : i32
    %c0_i32_0 = arith.constant 0 : i32
    %c0_i32_1 = arith.constant 0 : i32
    return %arg1, %c0_i32, %c0_i32_0 : i32, i32, i32
  }
  func.func @transform_12(%arg0: i32, %arg1: i32) -> (i32, i32, i32) {
    %c0_i32 = arith.constant 0 : i32
    %c0_i32_0 = arith.constant 0 : i32
    %c0_i32_1 = arith.constant 0 : i32
    return %arg1, %c0_i32, %c0_i32_0 : i32, i32, i32
  }
  func.func @transform_13(%arg0: i32, %arg1: i32) -> (i32, i32, i32) {
    %c0_i32 = arith.constant 0 : i32
    %c0_i32_0 = arith.constant 0 : i32
    %c0_i32_1 = arith.constant 0 : i32
    return %arg1, %c0_i32, %c0_i32_0 : i32, i32, i32
  }
  func.func @transform_14(%arg0: i32, %arg1: i32) -> (i32, i32, i32) {
    %c0_i32 = arith.constant 0 : i32
    %c0_i32_0 = arith.constant 0 : i32
    %c0_i32_1 = arith.constant 0 : i32
    return %arg1, %c0_i32, %c0_i32_0 : i32, i32, i32
  }
  func.func @transform_15(%arg0: i32, %arg1: i32) -> (i32, i32, i32) {
    %c0_i32 = arith.constant 0 : i32
    %c0_i32_0 = arith.constant 0 : i32
    %c0_i32_1 = arith.constant 0 : i32
    return %arg0, %c0_i32, %c0_i32_0 : i32, i32, i32
  }
}

module attributes {stable_mosaic.version = 11 : i64} {
  func.func @transformer_kernel(%arg0: i32, %arg1: i32, %arg2: memref<1x8x32xf32, #tpu.memory_space<vmem>>, %arg3: memref<1x32x32xbf16, #tpu.memory_space<vmem>>, %arg4: memref<1x1x32xf32, #tpu.memory_space<vmem>>, %arg5: memref<1x32x32xbf16, #tpu.memory_space<vmem>>, %arg6: memref<1x1x32xf32, #tpu.memory_space<vmem>>, %arg7: memref<1x32x32xbf16, #tpu.memory_space<vmem>>, %arg8: memref<1x1x32xf32, #tpu.memory_space<vmem>>, %arg9: memref<1x1x32xf32, #tpu.memory_space<vmem>>, %arg10: memref<1x1x32xf32, #tpu.memory_space<vmem>>, %arg11: memref<1x32x128xbf16, #tpu.memory_space<vmem>>, %arg12: memref<1x1x128xf32, #tpu.memory_space<vmem>>, %arg13: memref<1x128x32xbf16, #tpu.memory_space<vmem>>, %arg14: memref<1x1x32xf32, #tpu.memory_space<vmem>>, %arg15: memref<1x1x32xf32, #tpu.memory_space<vmem>>, %arg16: memref<1x1x32xf32, #tpu.memory_space<vmem>>, %arg17: memref<1x8x32xf32, #tpu.memory_space<vmem>>, %arg18: memref<8x32xf32, #tpu.memory_space<vmem>>, %arg19: memref<8x32xf32, #tpu.memory_space<vmem>>) attributes {dimension_semantics = [#tpu.dimension_semantics<parallel>, #tpu.dimension_semantics<arbitrary>], iteration_bounds = array<i64: 2, 2>, scalar_prefetch = 0 : i64, scratch_operands = 2 : i64, tpu.core_type = #tpu.core_type<tc>, window_params = [{transform_indices = @transform_0, window_bounds = array<i64: 1, 8, 32>}, {transform_indices = @transform_1, window_bounds = array<i64: 1, 32, 32>}, {transform_indices = @transform_2, window_bounds = array<i64: 1, 1, 32>}, {transform_indices = @transform_3, window_bounds = array<i64: 1, 32, 32>}, {transform_indices = @transform_4, window_bounds = array<i64: 1, 1, 32>}, {transform_indices = @transform_5, window_bounds = array<i64: 1, 32, 32>}, {transform_indices = @transform_6, window_bounds = array<i64: 1, 1, 32>}, {transform_indices = @transform_7, window_bounds = array<i64: 1, 1, 32>}, {transform_indices = @transform_8, window_bounds = array<i64: 1, 1, 32>}, {transform_indices = @transform_9, window_bounds = array<i64: 1, 32, 128>}, {transform_indices = @transform_10, window_bounds = array<i64: 1, 1, 128>}, {transform_indices = @transform_11, window_bounds = array<i64: 1, 128, 32>}, {transform_indices = @transform_12, window_bounds = array<i64: 1, 1, 32>}, {transform_indices = @transform_13, window_bounds = array<i64: 1, 1, 32>}, {transform_indices = @transform_14, window_bounds = array<i64: 1, 1, 32>}, {transform_indices = @transform_15, window_bounds = array<i64: 1, 8, 32>}]} {
    %c0_i32 = arith.constant 0 : i32
    %0 = arith.cmpi eq, %arg1, %c0_i32 : i32
    %1 = arith.extui %0 : i1 to i32
    %c0_i32_0 = arith.constant 0 : i32
    %2 = arith.cmpi ne, %1, %c0_i32_0 : i32
    scf.if %2 {
      %c0_75 = arith.constant 0 : index
      %c0_76 = arith.constant 0 : index
      %c0_77 = arith.constant 0 : index
      %164 = vector.load %arg2[%c0_75, %c0_76, %c0_77] : memref<1x8x32xf32, #tpu.memory_space<vmem>>, vector<1x8x32xf32>
      %165 = vector.shape_cast %164 : vector<1x8x32xf32> to vector<8x32xf32>
      %c0_78 = arith.constant 0 : index
      %c0_79 = arith.constant 0 : index
      %166 = vector.load %arg18[%c0_78, %c0_79] : memref<8x32xf32, #tpu.memory_space<vmem>>, vector<8x32xf32>
      tpu.vector_store %arg18[%c0_78, %c0_79], %165 {strides = array<i32>} : memref<8x32xf32, #tpu.memory_space<vmem>>, vector<8x32xf32>,
    } else {
    }
    %c0 = arith.constant 0 : index
    %c0_1 = arith.constant 0 : index
    %3 = vector.load %arg18[%c0, %c0_1] : memref<8x32xf32, #tpu.memory_space<vmem>>, vector<8x32xf32>
    %4 = arith.truncf %3 : vector<8x32xf32> to vector<8x32xbf16>
    %c0_2 = arith.constant 0 : index
    %c0_3 = arith.constant 0 : index
    %c0_4 = arith.constant 0 : index
    %5 = vector.load %arg3[%c0_2, %c0_3, %c0_4] : memref<1x32x32xbf16, #tpu.memory_space<vmem>>, vector<1x32x32xbf16>
    %6 = vector.shape_cast %5 : vector<1x32x32xbf16> to vector<32x32xbf16>
    %cst = arith.constant dense<0.000000e+00> : vector<8x32xf32>
    %7 = tpu.matmul %4, %6, %cst {dimension_numbers = #tpu.dot_dimension_numbers<[1], [0], [0], [1], [0, 0, 1, 1], [], []>} : vector<8x32xbf16>, vector<32x32xbf16>, vector<8x32xf32> -> vector<8x32xf32>
    %c0_5 = arith.constant 0 : index
    %c0_6 = arith.constant 0 : index
    %c0_7 = arith.constant 0 : index
    %8 = vector.load %arg4[%c0_5, %c0_6, %c0_7] : memref<1x1x32xf32, #tpu.memory_space<vmem>>, vector<1x1x32xf32>
    %9 = vector.shape_cast %8 : vector<1x1x32xf32> to vector<1x32xf32>
    %10 = vector.broadcast %9 : vector<1x32xf32> to vector<8x32xf32>
    %11 = arith.addf %7, %10 : vector<8x32xf32>
    %c0_8 = arith.constant 0 : index
    %c0_9 = arith.constant 0 : index
    %c0_10 = arith.constant 0 : index
    %12 = vector.load %arg5[%c0_8, %c0_9, %c0_10] : memref<1x32x32xbf16, #tpu.memory_space<vmem>>, vector<1x32x32xbf16>
    %13 = vector.shape_cast %12 : vector<1x32x32xbf16> to vector<32x32xbf16>
    %cst_11 = arith.constant dense<0.000000e+00> : vector<8x32xf32>
    %14 = tpu.matmul %4, %13, %cst_11 {dimension_numbers = #tpu.dot_dimension_numbers<[1], [0], [0], [1], [0, 0, 1, 1], [], []>} : vector<8x32xbf16>, vector<32x32xbf16>, vector<8x32xf32> -> vector<8x32xf32>
    %c0_12 = arith.constant 0 : index
    %c0_13 = arith.constant 0 : index
    %c0_14 = arith.constant 0 : index
    %15 = vector.load %arg6[%c0_12, %c0_13, %c0_14] : memref<1x1x32xf32, #tpu.memory_space<vmem>>, vector<1x1x32xf32>
    %16 = vector.shape_cast %15 : vector<1x1x32xf32> to vector<1x32xf32>
    %17 = vector.broadcast %16 : vector<1x32xf32> to vector<8x32xf32>
    %18 = arith.addf %14, %17 : vector<8x32xf32>
    %c0_15 = arith.constant 0 : index
    %c0_16 = arith.constant 0 : index
    %c0_17 = arith.constant 0 : index
    %19 = vector.load %arg7[%c0_15, %c0_16, %c0_17] : memref<1x32x32xbf16, #tpu.memory_space<vmem>>, vector<1x32x32xbf16>
    %20 = vector.shape_cast %19 : vector<1x32x32xbf16> to vector<32x32xbf16>
    %cst_18 = arith.constant dense<0.000000e+00> : vector<8x32xf32>
    %21 = tpu.matmul %4, %20, %cst_18 {dimension_numbers = #tpu.dot_dimension_numbers<[1], [0], [0], [1], [0, 0, 1, 1], [], []>} : vector<8x32xbf16>, vector<32x32xbf16>, vector<8x32xf32> -> vector<8x32xf32>
    %c0_19 = arith.constant 0 : index
    %c0_20 = arith.constant 0 : index
    %c0_21 = arith.constant 0 : index
    %22 = vector.load %arg8[%c0_19, %c0_20, %c0_21] : memref<1x1x32xf32, #tpu.memory_space<vmem>>, vector<1x1x32xf32>
    %23 = vector.shape_cast %22 : vector<1x1x32xf32> to vector<1x32xf32>
    %24 = vector.broadcast %23 : vector<1x32xf32> to vector<8x32xf32>
    %25 = arith.addf %21, %24 : vector<8x32xf32>
    %26 = arith.truncf %11 : vector<8x32xf32> to vector<8x32xbf16>
    %27 = vector.extract_strided_slice %26 {offsets = [0, 0], sizes = [8, 8], strides = [1, 1]} : vector<8x32xbf16> to vector<8x8xbf16>
    %28 = vector.shape_cast %27 : vector<8x8xbf16> to vector<1x8x8xbf16>
    %29 = vector.extract_strided_slice %26 {offsets = [0, 8], sizes = [8, 8], strides = [1, 1]} : vector<8x32xbf16> to vector<8x8xbf16>
    %30 = vector.shape_cast %29 : vector<8x8xbf16> to vector<1x8x8xbf16>
    %31 = vector.extract_strided_slice %26 {offsets = [0, 16], sizes = [8, 8], strides = [1, 1]} : vector<8x32xbf16> to vector<8x8xbf16>
    %32 = vector.shape_cast %31 : vector<8x8xbf16> to vector<1x8x8xbf16>
    %33 = vector.extract_strided_slice %26 {offsets = [0, 24], sizes = [8, 8], strides = [1, 1]} : vector<8x32xbf16> to vector<8x8xbf16>
    %34 = vector.shape_cast %33 : vector<8x8xbf16> to vector<1x8x8xbf16>
    %35 = tpu.concatenate %28, %30, %32, %34 in 0 : vector<1x8x8xbf16>, vector<1x8x8xbf16>, vector<1x8x8xbf16>, vector<1x8x8xbf16> -> vector<4x8x8xbf16>
    %36 = arith.truncf %18 : vector<8x32xf32> to vector<8x32xbf16>
    %37 = vector.extract_strided_slice %36 {offsets = [0, 0], sizes = [8, 8], strides = [1, 1]} : vector<8x32xbf16> to vector<8x8xbf16>
    %38 = vector.shape_cast %37 : vector<8x8xbf16> to vector<1x8x8xbf16>
    %39 = vector.extract_strided_slice %36 {offsets = [0, 8], sizes = [8, 8], strides = [1, 1]} : vector<8x32xbf16> to vector<8x8xbf16>
    %40 = vector.shape_cast %39 : vector<8x8xbf16> to vector<1x8x8xbf16>
    %41 = vector.extract_strided_slice %36 {offsets = [0, 16], sizes = [8, 8], strides = [1, 1]} : vector<8x32xbf16> to vector<8x8xbf16>
    %42 = vector.shape_cast %41 : vector<8x8xbf16> to vector<1x8x8xbf16>
    %43 = vector.extract_strided_slice %36 {offsets = [0, 24], sizes = [8, 8], strides = [1, 1]} : vector<8x32xbf16> to vector<8x8xbf16>
    %44 = vector.shape_cast %43 : vector<8x8xbf16> to vector<1x8x8xbf16>
    %45 = tpu.concatenate %38, %40, %42, %44 in 0 : vector<1x8x8xbf16>, vector<1x8x8xbf16>, vector<1x8x8xbf16>, vector<1x8x8xbf16> -> vector<4x8x8xbf16>
    %46 = arith.truncf %25 : vector<8x32xf32> to vector<8x32xbf16>
    %47 = vector.extract_strided_slice %46 {offsets = [0, 0], sizes = [8, 8], strides = [1, 1]} : vector<8x32xbf16> to vector<8x8xbf16>
    %48 = vector.shape_cast %47 : vector<8x8xbf16> to vector<1x8x8xbf16>
    %49 = vector.extract_strided_slice %46 {offsets = [0, 8], sizes = [8, 8], strides = [1, 1]} : vector<8x32xbf16> to vector<8x8xbf16>
    %50 = vector.shape_cast %49 : vector<8x8xbf16> to vector<1x8x8xbf16>
    %51 = vector.extract_strided_slice %46 {offsets = [0, 16], sizes = [8, 8], strides = [1, 1]} : vector<8x32xbf16> to vector<8x8xbf16>
    %52 = vector.shape_cast %51 : vector<8x8xbf16> to vector<1x8x8xbf16>
    %53 = vector.extract_strided_slice %46 {offsets = [0, 24], sizes = [8, 8], strides = [1, 1]} : vector<8x32xbf16> to vector<8x8xbf16>
    %54 = vector.shape_cast %53 : vector<8x8xbf16> to vector<1x8x8xbf16>
    %55 = tpu.concatenate %48, %50, %52, %54 in 0 : vector<1x8x8xbf16>, vector<1x8x8xbf16>, vector<1x8x8xbf16>, vector<1x8x8xbf16> -> vector<4x8x8xbf16>
    "tpu.trace_start"() <{level = 10 : i32, message = "bqd,bkd->bqk"}> : () -> ()
    %cst_22 = arith.constant dense<0.000000e+00> : vector<4x8x8xf32>
    %56 = tpu.matmul %35, %45, %cst_22 {dimension_numbers = #tpu.dot_dimension_numbers<[2], [2], [1], [1], [0, 0, 0, 1, 1, 1], [0], [0]>} : vector<4x8x8xbf16>, vector<4x8x8xbf16>, vector<4x8x8xf32> -> vector<4x8x8xf32>
    "tpu.trace_stop"() : () -> ()
    %cst_23 = arith.constant dense<0xFF800000> : vector<4x8xf32>
    %57 = vector.multi_reduction <maximumf>, %56, %cst_23 [2] : vector<4x8x8xf32> to vector<4x8xf32>
    %58 = vector.shape_cast %57 : vector<4x8xf32> to vector<4x8x1xf32>
    %59 = vector.broadcast %58 : vector<4x8x1xf32> to vector<4x8x8xf32>
    %60 = arith.subf %56, %59 : vector<4x8x8xf32>
    %61 = math.exp %60 : vector<4x8x8xf32>
    %cst_24 = arith.constant dense<0.000000e+00> : vector<4x8xf32>
    %62 = vector.multi_reduction <add>, %61, %cst_24 [2] : vector<4x8x8xf32> to vector<4x8xf32>
    %63 = vector.shape_cast %62 : vector<4x8xf32> to vector<4x8x1xf32>
    %64 = arith.truncf %61 : vector<4x8x8xf32> to vector<4x8x8xbf16>
    "tpu.trace_start"() <{level = 10 : i32, message = "bqk,bkd->bqd"}> : () -> ()
    %cst_25 = arith.constant dense<0.000000e+00> : vector<4x8x8xf32>
    %65 = tpu.matmul %64, %55, %cst_25 {dimension_numbers = #tpu.dot_dimension_numbers<[2], [1], [1], [2], [0, 0, 0, 1, 1, 2], [0], [0]>} : vector<4x8x8xbf16>, vector<4x8x8xbf16>, vector<4x8x8xf32> -> vector<4x8x8xf32>
    "tpu.trace_stop"() : () -> ()
    %66 = tpu.reciprocal %63 {approx = true} : vector<4x8x1xf32> -> vector<4x8x1xf32>
    %67 = vector.broadcast %66 : vector<4x8x1xf32> to vector<4x8x8xf32>
    %68 = arith.mulf %65, %67 : vector<4x8x8xf32>
    %69 = vector.extract_strided_slice %68 {offsets = [0, 0, 0], sizes = [1, 8, 8], strides = [1, 1, 1]} : vector<4x8x8xf32> to vector<1x8x8xf32>
    %70 = vector.shape_cast %69 : vector<1x8x8xf32> to vector<8x8xf32>
    %c0_26 = arith.constant 0 : index
    %c0_27 = arith.constant 0 : index
    %71 = vector.load %arg19[%c0_26, %c0_27] : memref<8x32xf32, #tpu.memory_space<vmem>>, vector<8x8xf32>
    tpu.vector_store %arg19[%c0_26, %c0_27], %70 {strides = array<i32>} : memref<8x32xf32, #tpu.memory_space<vmem>>, vector<8x8xf32>,
    %72 = vector.extract_strided_slice %68 {offsets = [1, 0, 0], sizes = [1, 8, 8], strides = [1, 1, 1]} : vector<4x8x8xf32> to vector<1x8x8xf32>
    %73 = vector.shape_cast %72 : vector<1x8x8xf32> to vector<8x8xf32>
    %c0_28 = arith.constant 0 : index
    %c8 = arith.constant 8 : index
    %74 = vector.load %arg19[%c0_28, %c8] : memref<8x32xf32, #tpu.memory_space<vmem>>, vector<8x8xf32>
    tpu.vector_store %arg19[%c0_28, %c8], %73 {strides = array<i32>} : memref<8x32xf32, #tpu.memory_space<vmem>>, vector<8x8xf32>,
    %75 = vector.extract_strided_slice %68 {offsets = [2, 0, 0], sizes = [1, 8, 8], strides = [1, 1, 1]} : vector<4x8x8xf32> to vector<1x8x8xf32>
    %76 = vector.shape_cast %75 : vector<1x8x8xf32> to vector<8x8xf32>
    %c0_29 = arith.constant 0 : index
    %c16 = arith.constant 16 : index
    %77 = vector.load %arg19[%c0_29, %c16] : memref<8x32xf32, #tpu.memory_space<vmem>>, vector<8x8xf32>
    tpu.vector_store %arg19[%c0_29, %c16], %76 {strides = array<i32>} : memref<8x32xf32, #tpu.memory_space<vmem>>, vector<8x8xf32>,
    %78 = vector.extract_strided_slice %68 {offsets = [3, 0, 0], sizes = [1, 8, 8], strides = [1, 1, 1]} : vector<4x8x8xf32> to vector<1x8x8xf32>
    %79 = vector.shape_cast %78 : vector<1x8x8xf32> to vector<8x8xf32>
    %c0_30 = arith.constant 0 : index
    %c24 = arith.constant 24 : index
    %80 = vector.load %arg19[%c0_30, %c24] : memref<8x32xf32, #tpu.memory_space<vmem>>, vector<8x8xf32>
    tpu.vector_store %arg19[%c0_30, %c24], %79 {strides = array<i32>} : memref<8x32xf32, #tpu.memory_space<vmem>>, vector<8x8xf32>,
    %c0_31 = arith.constant 0 : index
    %c0_32 = arith.constant 0 : index
    %81 = vector.load %arg19[%c0_31, %c0_32] : memref<8x32xf32, #tpu.memory_space<vmem>>, vector<8x32xf32>
    %82 = arith.addf %3, %81 : vector<8x32xf32>
    %c0_33 = arith.constant 0 : index
    %c0_34 = arith.constant 0 : index
    %c0_35 = arith.constant 0 : index
    %83 = vector.load %arg9[%c0_33, %c0_34, %c0_35] : memref<1x1x32xf32, #tpu.memory_space<vmem>>, vector<1x1x32xf32>
    %84 = vector.shape_cast %83 : vector<1x1x32xf32> to vector<1x32xf32>
    %c0_36 = arith.constant 0 : index
    %c0_37 = arith.constant 0 : index
    %c0_38 = arith.constant 0 : index
    %85 = vector.load %arg10[%c0_36, %c0_37, %c0_38] : memref<1x1x32xf32, #tpu.memory_space<vmem>>, vector<1x1x32xf32>
    %86 = vector.shape_cast %85 : vector<1x1x32xf32> to vector<1x32xf32>
    %cst_39 = arith.constant dense<0.000000e+00> : vector<8xf32>
    %87 = vector.multi_reduction <add>, %82, %cst_39 [1] : vector<8x32xf32> to vector<8xf32>
    %88 = vector.shape_cast %87 : vector<8xf32> to vector<8x1xf32>
    %cst_40 = arith.constant 3.200000e+01 : f32
    %89 = vector.broadcast %cst_40 : f32 to vector<8x1xf32>
    %90 = arith.divf %88, %89 : vector<8x1xf32>
    %91 = vector.broadcast %90 : vector<8x1xf32> to vector<8x32xf32>
    %92 = arith.subf %82, %91 : vector<8x32xf32>
    %93 = arith.mulf %92, %92 : vector<8x32xf32>
    %cst_41 = arith.constant dense<0.000000e+00> : vector<8xf32>
    %94 = vector.multi_reduction <add>, %93, %cst_41 [1] : vector<8x32xf32> to vector<8xf32>
    %95 = vector.shape_cast %94 : vector<8xf32> to vector<8x1xf32>
    %cst_42 = arith.constant 3.200000e+01 : f32
    %96 = vector.broadcast %cst_42 : f32 to vector<8x1xf32>
    %97 = arith.divf %95, %96 : vector<8x1xf32>
    %98 = vector.broadcast %90 : vector<8x1xf32> to vector<8x32xf32>
    %99 = arith.subf %82, %98 : vector<8x32xf32>
    %cst_43 = arith.constant 9.99999974E-6 : f32
    %100 = vector.broadcast %cst_43 : f32 to vector<8x1xf32>
    %101 = arith.addf %97, %100 : vector<8x1xf32>
    %102 = math.rsqrt %101 : vector<8x1xf32>
    %103 = vector.broadcast %102 : vector<8x1xf32> to vector<8x32xf32>
    %104 = arith.mulf %99, %103 : vector<8x32xf32>
    %105 = vector.broadcast %84 : vector<1x32xf32> to vector<8x32xf32>
    %106 = arith.mulf %104, %105 : vector<8x32xf32>
    %107 = vector.broadcast %86 : vector<1x32xf32> to vector<8x32xf32>
    %108 = arith.addf %106, %107 : vector<8x32xf32>
    %109 = arith.truncf %108 : vector<8x32xf32> to vector<8x32xbf16>
    %c0_44 = arith.constant 0 : index
    %c0_45 = arith.constant 0 : index
    %c0_46 = arith.constant 0 : index
    %110 = vector.load %arg11[%c0_44, %c0_45, %c0_46] : memref<1x32x128xbf16, #tpu.memory_space<vmem>>, vector<1x32x128xbf16>
    %111 = vector.shape_cast %110 : vector<1x32x128xbf16> to vector<32x128xbf16>
    %cst_47 = arith.constant dense<0.000000e+00> : vector<8x128xf32>
    %112 = tpu.matmul %109, %111, %cst_47 {dimension_numbers = #tpu.dot_dimension_numbers<[1], [0], [0], [1], [0, 0, 1, 1], [], []>} : vector<8x32xbf16>, vector<32x128xbf16>, vector<8x128xf32> -> vector<8x128xf32>
    %c0_48 = arith.constant 0 : index
    %c0_49 = arith.constant 0 : index
    %c0_50 = arith.constant 0 : index
    %113 = vector.load %arg12[%c0_48, %c0_49, %c0_50] : memref<1x1x128xf32, #tpu.memory_space<vmem>>, vector<1x1x128xf32>
    %114 = vector.shape_cast %113 : vector<1x1x128xf32> to vector<1x128xf32>
    %115 = vector.broadcast %114 : vector<1x128xf32> to vector<8x128xf32>
    %116 = arith.addf %112, %115 : vector<8x128xf32>
    %cst_51 = arith.constant 5.000000e-01 : f32
    %117 = vector.broadcast %cst_51 : f32 to vector<8x128xf32>
    %118 = arith.mulf %117, %116 : vector<8x128xf32>
    %cst_52 = arith.constant 0.707106769 : f32
    %119 = vector.broadcast %cst_52 : f32 to vector<8x128xf32>
    %120 = arith.mulf %116, %119 : vector<8x128xf32>
    %121 = math.erf %120 : vector<8x128xf32>
    %cst_53 = arith.constant 1.000000e+00 : f32
    %122 = vector.broadcast %cst_53 : f32 to vector<8x128xf32>
    %123 = arith.addf %122, %121 : vector<8x128xf32>
    %124 = arith.mulf %118, %123 : vector<8x128xf32>
    %125 = arith.truncf %124 : vector<8x128xf32> to vector<8x128xbf16>
    %c0_54 = arith.constant 0 : index
    %c0_55 = arith.constant 0 : index
    %c0_56 = arith.constant 0 : index
    %126 = vector.load %arg13[%c0_54, %c0_55, %c0_56] : memref<1x128x32xbf16, #tpu.memory_space<vmem>>, vector<1x128x32xbf16>
    %127 = vector.shape_cast %126 : vector<1x128x32xbf16> to vector<128x32xbf16>
    %cst_57 = arith.constant dense<0.000000e+00> : vector<8x32xf32>
    %128 = tpu.matmul %125, %127, %cst_57 {dimension_numbers = #tpu.dot_dimension_numbers<[1], [0], [0], [1], [0, 0, 1, 1], [], []>} : vector<8x128xbf16>, vector<128x32xbf16>, vector<8x32xf32> -> vector<8x32xf32>
    %c0_58 = arith.constant 0 : index
    %c0_59 = arith.constant 0 : index
    %c0_60 = arith.constant 0 : index
    %129 = vector.load %arg14[%c0_58, %c0_59, %c0_60] : memref<1x1x32xf32, #tpu.memory_space<vmem>>, vector<1x1x32xf32>
    %130 = vector.shape_cast %129 : vector<1x1x32xf32> to vector<1x32xf32>
    %131 = vector.broadcast %130 : vector<1x32xf32> to vector<8x32xf32>
    %132 = arith.addf %128, %131 : vector<8x32xf32>
    %133 = arith.addf %108, %132 : vector<8x32xf32>
    %c0_61 = arith.constant 0 : index
    %c0_62 = arith.constant 0 : index
    %c0_63 = arith.constant 0 : index
    %134 = vector.load %arg15[%c0_61, %c0_62, %c0_63] : memref<1x1x32xf32, #tpu.memory_space<vmem>>, vector<1x1x32xf32>
    %135 = vector.shape_cast %134 : vector<1x1x32xf32> to vector<1x32xf32>
    %c0_64 = arith.constant 0 : index
    %c0_65 = arith.constant 0 : index
    %c0_66 = arith.constant 0 : index
    %136 = vector.load %arg16[%c0_64, %c0_65, %c0_66] : memref<1x1x32xf32, #tpu.memory_space<vmem>>, vector<1x1x32xf32>
    %137 = vector.shape_cast %136 : vector<1x1x32xf32> to vector<1x32xf32>
    %cst_67 = arith.constant dense<0.000000e+00> : vector<8xf32>
    %138 = vector.multi_reduction <add>, %133, %cst_67 [1] : vector<8x32xf32> to vector<8xf32>
    %139 = vector.shape_cast %138 : vector<8xf32> to vector<8x1xf32>
    %cst_68 = arith.constant 3.200000e+01 : f32
    %140 = vector.broadcast %cst_68 : f32 to vector<8x1xf32>
    %141 = arith.divf %139, %140 : vector<8x1xf32>
    %142 = vector.broadcast %141 : vector<8x1xf32> to vector<8x32xf32>
    %143 = arith.subf %133, %142 : vector<8x32xf32>
    %144 = arith.mulf %143, %143 : vector<8x32xf32>
    %cst_69 = arith.constant dense<0.000000e+00> : vector<8xf32>
    %145 = vector.multi_reduction <add>, %144, %cst_69 [1] : vector<8x32xf32> to vector<8xf32>
    %146 = vector.shape_cast %145 : vector<8xf32> to vector<8x1xf32>
    %cst_70 = arith.constant 3.200000e+01 : f32
    %147 = vector.broadcast %cst_70 : f32 to vector<8x1xf32>
    %148 = arith.divf %146, %147 : vector<8x1xf32>
    %149 = vector.broadcast %141 : vector<8x1xf32> to vector<8x32xf32>
    %150 = arith.subf %133, %149 : vector<8x32xf32>
    %cst_71 = arith.constant 9.99999974E-6 : f32
    %151 = vector.broadcast %cst_71 : f32 to vector<8x1xf32>
    %152 = arith.addf %148, %151 : vector<8x1xf32>
    %153 = math.rsqrt %152 : vector<8x1xf32>
    %154 = vector.broadcast %153 : vector<8x1xf32> to vector<8x32xf32>
    %155 = arith.mulf %150, %154 : vector<8x32xf32>
    %156 = vector.broadcast %135 : vector<1x32xf32> to vector<8x32xf32>
    %157 = arith.mulf %155, %156 : vector<8x32xf32>
    %158 = vector.broadcast %137 : vector<1x32xf32> to vector<8x32xf32>
    %159 = arith.addf %157, %158 : vector<8x32xf32>
    %c0_72 = arith.constant 0 : index
    %c0_73 = arith.constant 0 : index
    %160 = vector.load %arg18[%c0_72, %c0_73] : memref<8x32xf32, #tpu.memory_space<vmem>>, vector<8x32xf32>
    tpu.vector_store %arg18[%c0_72, %c0_73], %159 {strides = array<i32>} : memref<8x32xf32, #tpu.memory_space<vmem>>, vector<8x32xf32>,
    %c1_i32 = arith.constant 1 : i32
    %161 = arith.cmpi eq, %arg1, %c1_i32 : i32
    %162 = arith.extui %161 : i1 to i32
    %c0_i32_74 = arith.constant 0 : i32
    %163 = arith.cmpi ne, %162, %c0_i32_74 : i32
    scf.if %163 {
      %164 = vector.shape_cast %159 : vector<8x32xf32> to vector<1x8x32xf32>
      %c0_75 = arith.constant 0 : index
      %c0_76 = arith.constant 0 : index
      %c0_77 = arith.constant 0 : index
      %165 = vector.load %arg17[%c0_75, %c0_76, %c0_77] : memref<1x8x32xf32, #tpu.memory_space<vmem>>, vector<1x8x32xf32>
      tpu.vector_store %arg17[%c0_75, %c0_76, %c0_77], %164 {strides = array<i32>} : memref<1x8x32xf32, #tpu.memory_space<vmem>>, vector<1x8x32xf32>,
    } else {
    }
    return
  }
  func.func @transform_0(%arg0: i32, %arg1: i32) -> (i32, i32, i32) {
    %c0_i32 = arith.constant 0 : i32
    %c0_i32_0 = arith.constant 0 : i32
    %c0_i32_1 = arith.constant 0 : i32
    return %arg0, %c0_i32, %c0_i32_0 : i32, i32, i32
  }
  func.func @transform_1(%arg0: i32, %arg1: i32) -> (i32, i32, i32) {
    %c0_i32 = arith.constant 0 : i32
    %c0_i32_0 = arith.constant 0 : i32
    %c0_i32_1 = arith.constant 0 : i32
    return %arg1, %c0_i32, %c0_i32_0 : i32, i32, i32
  }
  func.func @transform_2(%arg0: i32, %arg1: i32) -> (i32, i32, i32) {
    %c0_i32 = arith.constant 0 : i32
    %c0_i32_0 = arith.constant 0 : i32
    %c0_i32_1 = arith.constant 0 : i32
    return %arg1, %c0_i32, %c0_i32_0 : i32, i32, i32
  }
  func.func @transform_3(%arg0: i32, %arg1: i32) -> (i32, i32, i32) {
    %c0_i32 = arith.constant 0 : i32
    %c0_i32_0 = arith.constant 0 : i32
    %c0_i32_1 = arith.constant 0 : i32
    return %arg1, %c0_i32, %c0_i32_0 : i32, i32, i32
  }
  func.func @transform_4(%arg0: i32, %arg1: i32) -> (i32, i32, i32) {
    %c0_i32 = arith.constant 0 : i32
    %c0_i32_0 = arith.constant 0 : i32
    %c0_i32_1 = arith.constant 0 : i32
    return %arg1, %c0_i32, %c0_i32_0 : i32, i32, i32
  }
  func.func @transform_5(%arg0: i32, %arg1: i32) -> (i32, i32, i32) {
    %c0_i32 = arith.constant 0 : i32
    %c0_i32_0 = arith.constant 0 : i32
    %c0_i32_1 = arith.constant 0 : i32
    return %arg1, %c0_i32, %c0_i32_0 : i32, i32, i32
  }
  func.func @transform_6(%arg0: i32, %arg1: i32) -> (i32, i32, i32) {
    %c0_i32 = arith.constant 0 : i32
    %c0_i32_0 = arith.constant 0 : i32
    %c0_i32_1 = arith.constant 0 : i32
    return %arg1, %c0_i32, %c0_i32_0 : i32, i32, i32
  }
  func.func @transform_7(%arg0: i32, %arg1: i32) -> (i32, i32, i32) {
    %c0_i32 = arith.constant 0 : i32
    %c0_i32_0 = arith.constant 0 : i32
    %c0_i32_1 = arith.constant 0 : i32
    return %arg1, %c0_i32, %c0_i32_0 : i32, i32, i32
  }
  func.func @transform_8(%arg0: i32, %arg1: i32) -> (i32, i32, i32) {
    %c0_i32 = arith.constant 0 : i32
    %c0_i32_0 = arith.constant 0 : i32
    %c0_i32_1 = arith.constant 0 : i32
    return %arg1, %c0_i32, %c0_i32_0 : i32, i32, i32
  }
  func.func @transform_9(%arg0: i32, %arg1: i32) -> (i32, i32, i32) {
    %c0_i32 = arith.constant 0 : i32
    %c0_i32_0 = arith.constant 0 : i32
    %c0_i32_1 = arith.constant 0 : i32
    return %arg1, %c0_i32, %c0_i32_0 : i32, i32, i32
  }
  func.func @transform_10(%arg0: i32, %arg1: i32) -> (i32, i32, i32) {
    %c0_i32 = arith.constant 0 : i32
    %c0_i32_0 = arith.constant 0 : i32
    %c0_i32_1 = arith.constant 0 : i32
    return %arg1, %c0_i32, %c0_i32_0 : i32, i32, i32
  }
  func.func @transform_11(%arg0: i32, %arg1: i32) -> (i32, i32, i32) {
    %c0_i32 = arith.constant 0 : i32
    %c0_i32_0 = arith.constant 0 : i32
    %c0_i32_1 = arith.constant 0 : i32
    return %arg1, %c0_i32, %c0_i32_0 : i32, i32, i32
  }
  func.func @transform_12(%arg0: i32, %arg1: i32) -> (i32, i32, i32) {
    %c0_i32 = arith.constant 0 : i32
    %c0_i32_0 = arith.constant 0 : i32
    %c0_i32_1 = arith.constant 0 : i32
    return %arg1, %c0_i32, %c0_i32_0 : i32, i32, i32
  }
  func.func @transform_13(%arg0: i32, %arg1: i32) -> (i32, i32, i32) {
    %c0_i32 = arith.constant 0 : i32
    %c0_i32_0 = arith.constant 0 : i32
    %c0_i32_1 = arith.constant 0 : i32
    return %arg1, %c0_i32, %c0_i32_0 : i32, i32, i32
  }
  func.func @transform_14(%arg0: i32, %arg1: i32) -> (i32, i32, i32) {
    %c0_i32 = arith.constant 0 : i32
    %c0_i32_0 = arith.constant 0 : i32
    %c0_i32_1 = arith.constant 0 : i32
    return %arg1, %c0_i32, %c0_i32_0 : i32, i32, i32
  }
  func.func @transform_15(%arg0: i32, %arg1: i32) -> (i32, i32, i32) {
    %c0_i32 = arith.constant 0 : i32
    %c0_i32_0 = arith.constant 0 : i32
    %c0_i32_1 = arith.constant 0 : i32
    return %arg0, %c0_i32, %c0_i32_0 : i32, i32, i32
  }
}

</mosaic_0001>

<bundles_post_ra>
// kernel: tpu_custom_call.1
= control target key start
LH: loop header
LB: loop body
LE: loop exit
PB: predicated region body
PF: predicated region fallthrough
CT: control target
= control target key end

     0   :  { %s2868_s0 = inlined_call_operand.vmem [shape: f32[2,8,32], index: 0, kind: input, shape index: {}]   ;;  %s2869_s1 = inlined_call_operand.vmem [shape: bf16[2,32,32], index: 1, kind: input, shape index: {}]   ;;  %s2870_s2 = inlined_call_operand.vmem [shape: f32[2,1,32], index: 2, kind: input, shape index: {}]   ;;  %s2871_s3 = inlined_call_operand.vmem [shape: bf16[2,32,32], index: 3, kind: input, shape index: {}]   ;;  %s2872_s4 = inlined_call_operand.vmem [shape: f32[2,1,32], index: 4, kind: input, shape index: {}]   ;;  %s2873_s5 = inlined_call_operand.vmem [shape: bf16[2,32,32], index: 5, kind: input, shape index: {}]   ;;  %s2874_s6 = inlined_call_operand.vmem [shape: f32[2,1,32], index: 6, kind: input, shape index: {}]   ;;  %s2875_s7 = inlined_call_operand.vmem [shape: f32[2,1,32], index: 7, kind: input, shape index: {}]   ;;  %s2876_s8 = inlined_call_operand.vmem [shape: f32[2,1,32], index: 8, kind: input, shape index: {}]   ;;  %s2877_s9 = inlined_call_operand.vmem [shape: bf16[2,32,128], index: 9, kind: input, shape index: {}]   ;;  %s2878_s10 = inlined_call_operand.vmem [shape: f32[2,1,128], index: 10, kind: input, shape index: {}]   ;;  %s2879_s11 = inlined_call_operand.vmem [shape: bf16[2,128,32], index: 11, kind: input, shape index: {}]   ;;  %s2880_s12 = inlined_call_operand.vmem [shape: f32[2,1,32], index: 12, kind: input, shape index: {}]   ;;  %s2881_s13 = inlined_call_operand.vmem [shape: f32[2,1,32], index: 13, kind: input, shape index: {}]   ;;  %s2882_s14 = inlined_call_operand.vmem [shape: f32[2,1,32], index: 14, kind: input, shape index: {}]   ;;  %s2883_s15 = inlined_call_operand.hbm [shape: f32[2,8,32], index: 15, kind: output, shape index: {}]  }
   0x1   :  { %2899 = sst [smem:[#allocation19_spill]] %s2868_s0 }
   0x2   :  { %2900 = sst [smem:[#allocation20_spill]] %s2869_s1 }
   0x3   :  { %2901 = sst [smem:[#allocation21_spill]] %s2871_s3 }
   0x4   :  { %2902 = sst [smem:[#allocation22_spill]] %s2873_s5 }
   0x5   :  { %2903 = sst [smem:[#allocation23_spill]] %s2875_s7 }
   0x6   :  { %2904 = sst [smem:[#allocation24_spill]] %s2876_s8 }
   0x7   :  { %2905 = sst [smem:[#allocation25_spill]] %s2877_s9 }
   0x8   :  { %2906 = sst [smem:[#allocation26_spill]] %s2879_s11 }
   0x9   :  { %2907 = sst [smem:[#allocation27_spill]] %s2881_s13 }
   0xa   :  { %2908 = sst [smem:[#allocation28_spill]] %s2882_s14 }
   0xb   :  { %2909 = sst [smem:[#allocation29_spill]] %s2883_s15 }
   0xc   :  { %20 = vsyncpa [#allocation4], 0 }
   0xd   :  { %22 = vsyncpa [#allocation4 + $0x1], 0  ;;  %s2426_s18 = smov 0   ;;  %s2428_s19 = smov 0  }
   0xe   :  { %s2430_s20 = smov 0   ;;  %s2432_s21 = smov 0  }
   0xf   :  { %s2434_s22 = smov 0   ;;  %s2436_s23 = smov 0  }
  0x10   :  { %s2438_s24 = smov 0   ;;  %s2440_s25 = smov 0  }
  0x11 LB: > { %2910 = sst [smem:[#allocation6_spill]] %s2307_s18  ;;  %s2007_s26 = sadd.s32 4294967295, %s2335_s25   ;;  %s2335_s25 = sphi %s2440_s25, %s28_s25   ;;  %s2331_s24 = sphi %s2438_s24, %s2960_s24   ;;  %s2327_s23 = sphi %s2436_s23, %s2959_s23   ;;  %s2323_s22 = sphi %s2434_s22, %s2958_s22   ;;  %s2319_s21 = sphi %s2432_s21, %s2957_s21   ;;  %s2315_s20 = sphi %s2430_s20, %s2956_s20   ;;  %s2311_s19 = sphi %s2428_s19, %s2955_s19   ;;  %s2307_s18 = sphi %s2426_s18, %s2954_s18  }
  0x12   : > { %2911 = sst [smem:[#allocation7_spill]] %s2311_s19  ;;  %s2008_s27 = sadd.s32 4294967294, %s2335_s25  }
  0x13   : > { %2912 = sst [smem:[#allocation8_spill]] %s2315_s20  ;;  %s37_s28 = sadd.s32 1, %s2327_s23 }
  0x14   : > { %2913 = sst [smem:[#allocation9_spill]] %s2319_s21  ;;  %p38_p0 = scmp.ge.s32.totalorder %s37_s28, 2 }
  0x15   : > { %2914 = sst [smem:[#allocation10_spill]] %s2323_s22  ;;  %s40_s29 = sadd.s32 1, %s2331_s24 }
  0x16   : > { %2915 = sst [smem:[#allocation11_spill]] %s2327_s23  ;;  %p447_p1 = scmp.ne.s32.totalorder %s2315_s20, %s2311_s19 }
  0x17   : > { %2916 = sst [smem:[#allocation12_spill]] %s2331_s24  ;;  %p448_p2 = scmp.eq.s32.totalorder %s2007_s26, 3 }
  0x18   : > { %2917 = sst [smem:[#allocation13_spill]] %s2335_s25  ;;  %s2962_s28 = smov (%p38_p0, %s37_s28), 0 }
  0x19   : > { %2918 = sst [smem:[#allocation14_spill]] %s2962_s28  ;;  %s2964_s29 = smov (!%p38_p0, %s40_s29), %s2331_s24 }
  0x1a   : > { %p2475_p3 = por %p448_p2, %p447_p1  ;;  %p453_p4 = scmp.ne.s32.totalorder %s2311_s19, %s2307_s18 }
  0x1b   : > { %p42_p5 = scmp.ge.s32.totalorder %s2964_s29, 2  ;;  %p454_p6 = scmp.eq.s32.totalorder %s2008_s27, 3 }
  0x1c   : > { %s2919_s30 = scalar_select %p2475_p3, 1, 0 }
  0x1d   : > { %p2011_p7 = scmp.ge.s32.totalorder %s2335_s25, 1  ;;  %p573_p8 = scmp.lt.s32.totalorder %s2335_s25, 5 }
  0x1e   : > { %2920 = sst [smem:[#allocation15_spill]] %s2919_s30  ;;  %s2966_s29 = smov (%p42_p5, %s2964_s29), 0 }
  0x1f   : > { %2921 = sst [smem:[#allocation16_spill]] %s2966_s29  ;;  %p2485_p9 = por %p454_p6, %p453_p4 }
  0x20   : > { %p574_p10 = pnand %p2011_p7, %p573_p8  ;;  %s434_s17 = ssub.s32 %s2331_s24, %s2966_s29 }
  0x21   : > { %s2922_s16 = scalar_select %p2485_p9, 1, 0 }
  0x22   : > { %s437_s26 = sadd.s32 1, %s2315_s20  ;;  %p435_p11 = scmp.eq.s32.totalorder %s434_s17, 0 }
  0x23   : > { %2923 = sst [smem:[#allocation17_spill]] %s2922_s16  ;;  %577 = sbr.rel (%p574_p10) target bundleno = 1799 (0x707), region = 80 }
  0x24   : > { %s2493_s28 = scalar_select %p435_p11, %s2315_s20, %s437_s26  }
  0x25   : > { %s2888_s27 = sand.u32 (!%p574_p10), 1, %s2311_s19   ;;  %p672_p12 = scmp.lt.s32.totalorder (!%p574_p10), %s2323_s22, 1 }
  0x26   : > { %2924 = sst [smem:[#allocation18_spill]] %s2493_s28  ;;  %s2499_s23 = sshll.u32 (!%p574_p10), %s2888_s27, 3 }
  0x27   : > { %p676_p13 = scmp.lt.s32.totalorder (!%p574_p10), %s2319_s21, 1  ;;  %s2925_s0 = sld [smem:[#allocation19_spill]] (!%p574_p10) }
  0x28   : > { %s673_s16 = scalar_select %p672_p12, %s2323_s22, 1 }
  0x29   : > { %s2504_s18 = scalar_select %p676_p13, %s2319_s21, 1 }
  0x2a   : > { %s2013_s17 = sshll.u32 %s673_s16, 3  ;;  %s2926_s1 = sld [smem:[#allocation20_spill]] }
  0x2b   : > { %s2107_s24 = sshll.u32 %s2504_s18, 4  ;;  %s2927_s3 = sld [smem:[#allocation21_spill]] }
  0x2c   : > { %s2928_s5 = sld [smem:[#allocation22_spill]]  ;;  %s713_s29 = scalar_lea.vmem %s2878_s10, %s2504_s18 }
  0x2d   : > { %s675_s27 = scalar_lea.vmem %s2925_s0, %s2013_s17  ;;  %s2931_s9 = sld [smem:[#allocation25_spill]] }
  0x2e   : > { %s2932_s30 = sld [smem:[#allocation26_spill]]  ;;  %s671_s17 = scalar_lea.vmem [#allocation3], %s2499_s23 }
  0x2f   : > { %s2933_s22 = sld [smem:[#allocation27_spill]] }
  0x30   : > { %s680_s25 = scalar_lea.vmem %s2926_s1, %s2107_s24  ;;  %s721_s1 = scalar_lea.vmem %s2880_s12, %s2504_s18 }
  0x31   : > { %s688_s16 = scalar_lea.vmem %s2927_s3, %s2107_s24  ;;  %s2935_s26 = sld [smem:[#allocation9_spill]] }
  0x32   : > { %s2527_s0 = scalar_lea.vmem %s2928_s5, %s2107_s24  ;;  %s2111_s5 = sshll.u32 %s2504_s18, 6 }
  0x33   : > { %s2544_s14 = scalar_lea.vmem %s2931_s9, %s2107_s24  ;;  %s2934_s9 = sld [smem:[#allocation28_spill]] }
  0x34   : > { %s2558_s7 = scalar_lea.vmem %s2932_s30, %s2111_s5 }
  0x35   : > { %s724_s3 = scalar_lea.vmem %s2933_s22, %s2504_s18 }
  0x37   : > { %p2024_p0 = scmp.ne.s32.totalorder %s2935_s26, 0 }
  0x39   : > { %s727_s8 = scalar_lea.vmem %s2934_s9, %s2504_s18  ;;  %732 = sbr.rel (%p2024_p0) target bundleno = 64 (0x40), region = 84 }
  0x3e   : > { %v733_v0 = vld [vmem:[%s675_s27] sm:$0xff]  ;;  %vm734_vm0 = vcmask 261120  }
  0x3f   : > { %735 = vst.msk [vmem:[#allocation2] sm:$0xff] %vm734_vm0, %v733_v0 }
  0x40 PF: > { %v2113_v1 = vld [vmem:[%s680_s25 + $0x8] sm:$0xff]  ;;  %v2112_v2 = vld [vmem:[%s680_s25] sm:$0xff]  ;;  %vm758_vm1 = vcmask 261120   ;;  %s2936_s25 = scalar_lea.vmem %s2870_s2, %s2504_s18  ;;  %s2337_s27 = smov 112   ;;  %v2340_v25 = vmov 1983009808  }
  0x41   : > { %768 = vmatpush.bf16.msra.mxu1 %v2113_v1  ;;  %v2115_v4 = vld [vmem:[%s688_s16 + $0x8] sm:$0xff]  ;;  %v2114_v6 = vld [vmem:[%s688_s16] sm:$0xff]  ;;  %s2338_s16 = smov 104   ;;  %s2339_s20 = smov 120   ;;  %v863_v26 = vunpack.c.l.s4 %v2340_v25  ;;  %v2341_v41 = vmov 1934713408  }
  0x42   : > { %v2117_v7 = vld [vmem:[%s2527_s0 + $0x8] sm:$0xff]  ;;  %v2116_v8 = vld [vmem:[%s2527_s0] sm:$0xff]  ;;  %s2937_s0 = scalar_lea.vmem %s2872_s4, %s2504_s18  ;;  %s2938_s15 = scalar_lea.vmem %s2874_s6, %s2504_s18  ;;  %v877_v42 = vunpack.c.l.s4 %v2341_v41  ;;  %vm872_vm2 = vcmask 1047556   ;;  %vm1208_vm3 = vcmask 64512   ;;  %vm1328_vm4 = vcmask 1043456  }
  0x43   : > { %834 = vmatpush.bf16.msra.mxu2 %v2117_v7  ;;  %v2208_v9 = vld [vmem:[%s2936_s25] ss:$0 sm:$0xff]  ;;  %v2599_v28 = vunpack.c.0.s8 %v863_v26  ;;  %s2342_s19 = smov 16   ;;  %s2343_s21 = smov 24   ;;  %vm1534_vm5 = vcmask 130048   ;;  %vm1536_vm6 = vcmask 195584  }
  0x44   : > { %v2209_v14 = vld [vmem:[%s2937_s0] ss:$0 sm:$0xff]  ;;  %v2605_v55 = vunpack.c.0.s8 %v877_v42  ;;  %s2344_s24 = smov 8   ;;  %s2939_s26 = sld [smem:[#allocation23_spill]] }
  0x45   : > { %769 = vmatpush.bf16.msra.mxu1 %v2112_v2  ;;  %v2210_v19 = vld [vmem:[%s2938_s15] ss:$0 sm:$0xff] }
  0x46   : > { %v2570_v3 = vld [vmem:[#allocation2] sm:$0xff] }
  0x47   : > { %v737_v5 = vpack.c.bf16 %v2570_v3, %v2570_v3  ;;  %835 = vmatpush.bf16.msra.mxu2 %v2116_v8 }
  0x49   : > { %801 = vmatpush.bf16.msrb.mxu1 %v2115_v4 }
  0x4a   : > { %2033 = vmatmul.msk.bf16.vlgmr.msra.gmra.mxu1 %vm758_vm1, %v737_v5  ;;  %2051 = vmatmul.msk.bf16.vlgmr.msra.gmra.mxu2 %vm758_vm1, %v737_v5  ;;  %s2940_s5 = scalar_lea.vmem %s2939_s26, %s2504_s18 }
  0x4d   : > { %802 = vmatpush.bf16.msrb.mxu1 %v2114_v6 }
  0x5a   : > { %2042 = vmatmul.msk.bf16.vlgmr.msrb.gmra.mxu1 %vm758_vm1, %v737_v5 }
  0xc7   : > { %v771_v10 = vpop.f32.mrf.mxu1 }
  0xc8   : > { %v772_v11 = vadd.f32 %v2208_v9, %v771_v10 }
  0xca   : > { %v841_v12 = vpack.c.bf16 %v772_v11, %v772_v11 }
  0xcc   : > { %845 = vrot.lane.b32.xlu2 %v841_v12, %s2337_s27  ;;  %v852_v48 = vshrl.u32 %v841_v12, 16 }
  0xcd   : > { %v837_v20 = vpop.f32.mrf.mxu2 }
  0xce   : > { %v838_v21 = vadd.f32 %v2210_v19, %v837_v20 }
  0xcf   : > { %v773_v13 = vpop.f32.mrf.mxu1 }
  0xd0   : > { %v2594_v22 = vpack.c.bf16 %v838_v21, %v838_v21 }
  0xd4   : > { %847 = vrot.lane.b32.xlu2 %v841_v12, %s2338_s16 }
  0xd5   : > { %v839_v23 = vpop.f32.mrf.mxu2 }
  0xd7   : > { %v804_v15 = vpop.f32.mrf.mxu1 }
  0xd8   : > { %v805_v16 = vadd.f32 %v2209_v14, %v804_v15 }
  0xda   : > { %v964_v17 = vpack.c.bf16 %v805_v16, %v805_v16 }
  0xdc   : > { %970 = vrot.lane.b32.xlu1 %v964_v17, %s2338_s16  ;;  %966 = vrot.lane.b32.xlu0 %v964_v17, %s2339_s20  ;;  %v975_v35 = vshrl.u32 %v964_v17, 16 }
  0xdd   : > { %1092 = vrot.lane.b32.xlu2 %v2594_v22, %s2338_s16 }
  0xdf   : > { %v806_v18 = vpop.f32.mrf.mxu1 }
  0xe4   : > { %968 = vrot.lane.b32.xlu0 %v964_v17, %s2337_s27  ;;  %843 = vrot.lane.b32.xlu1 %v841_v12, %s2339_s20 }
  0xec   : > { %1088 = vrot.lane.b32.xlu0 %v2594_v22, %s2339_s20  ;;  %1090 = vrot.lane.b32.xlu1 %v2594_v22, %s2337_s27  ;;  %s2941_s27 = sld [smem:[#allocation24_spill]] }
  0xf2   : > { %s2942_s16 = scalar_lea.vmem %s2941_s27, %s2504_s18 }
 0x126   : > { %v846_v24 = vpop.permute.xlu2 %845 }
 0x127   : > { %v858_v36 = vshrl.u32 %v846_v24, 16 }
 0x12e   : > { %v848_v27 = vpop.permute.xlu2 %847 }
 0x12f   : > { %v857_v29 = vpack.i.b16 %v848_v27, %v846_v24  ;;  %v859_v33 = vshrl.u32 %v848_v27, 16 }
 0x131   : > { %v870_v37 = vperm.slane %v857_v29, %v2599_v28  ;;  %v860_v39 = vpack.i.b16 %v859_v33, %v858_v36 }
 0x133   : > { %v871_v43 = vrot.slane %v870_v37, 4  ;;  %v897_v53 = vperm.slane %v860_v39, %v2599_v28 }
 0x135   : > { %v898_v1 = vrot.slane %v897_v53, 4 }
 0x14e   : > { %v971_v30 = vpop.permute.xlu1 %970  ;;  %v967_v31 = vpop.permute.xlu0 %966 }
 0x14f   : > { %v976_v32 = vshrl.u32 %v967_v31, 16  ;;  %v974_v34 = vpack.i.b16 %v967_v31, %v964_v17  ;;  %v982_v44 = vshrl.u32 %v971_v30, 16 }
 0x151   : > { %v977_v38 = vpack.i.b16 %v976_v32, %v975_v35  ;;  %v988_v40 = vperm.slane %v974_v34, %v2599_v28 }
 0x153   : > { %v1014_v45 = vperm.slane %v977_v38, %v2599_v28  ;;  %v996_v54 = vrot.slane %v988_v40, 4 }
 0x155   : > { %v1022_v60 = vrot.slane %v1014_v45, 4 }
 0x156   : > { %v969_v46 = vpop.permute.xlu0 %968  ;;  %v844_v47 = vpop.permute.xlu1 %843 }
 0x157   : > { %v980_v49 = vpack.i.b16 %v971_v30, %v969_v46  ;;  %v981_v50 = vshrl.u32 %v969_v46, 16  ;;  %v851_v51 = vpack.i.b16 %v844_v47, %v841_v12  ;;  %v853_v52 = vshrl.u32 %v844_v47, 16 }
 0x159   : > { %v983_v56 = vpack.i.b16 %v982_v44, %v981_v50  ;;  %v993_v57 = vperm.slane %v980_v49, %v2599_v28  ;;  %v854_v58 = vpack.i.b16 %v853_v52, %v852_v48  ;;  %v865_v59 = vperm.slane %v851_v51, %v2599_v28 }
 0x15b   : > { %v994_v61 = vrot.slane %v993_v57, 4  ;;  %v997_v62 = vsel %vm872_vm2, %v993_v57, %v996_v54  ;;  %v1019_v63 = vperm.slane %v983_v56, %v2599_v28  ;;  %v873_v0 = vsel %vm872_vm2, %v871_v43, %v865_v59 }
 0x15c   : > { %v1005_v2 = vperm.slane %v997_v62, %v2605_v55  ;;  %v874_v4 = vrot.slane %v865_v59, 4  ;;  %v892_v5 = vperm.slane %v854_v58, %v2599_v28  ;;  %v879_v9 = vperm.slane %v873_v0, %v2605_v55 }
 0x15d   : > { %v995_v6 = vsel %vm872_vm2, %v994_v61, %v988_v40  ;;  %v1020_v7 = vrot.slane %v1019_v63, 4  ;;  %v1023_v8 = vsel %vm872_vm2, %v1019_v63, %v1022_v60 }
 0x15e   : > { %v1001_v10 = vperm.slane %v995_v6, %v2605_v55  ;;  %v1008_v11 = vrot.slane %v1005_v2, 4  ;;  %v1031_v12 = vperm.slane %v1023_v8, %v2605_v55  ;;  %v875_v13 = vsel %vm872_vm2, %v870_v37, %v874_v4 }
 0x15f   : > { %v1021_v14 = vsel %vm872_vm2, %v1020_v7, %v1014_v45  ;;  %v883_v15 = vperm.slane %v875_v13, %v2605_v55  ;;  %v899_v16 = vsel %vm872_vm2, %v898_v1, %v892_v5  ;;  %v884_v23 = vrot.slane %v879_v9, 4 }
 0x160   : > { %v1006_v17 = vrot.slane %v1001_v10, 4  ;;  %v1009_v18 = vsel %vm872_vm2, 0, %v1008_v11  ;;  %v1027_v19 = vperm.slane %v1021_v14, %v2605_v55  ;;  %v1034_v20 = vrot.slane %v1031_v12, 4 }
 0x161   : > { %v1041_v21 = vrot.slane %v1009_v18, 4  ;;  %v886_v24 = vrot.slane %v883_v15, 4  ;;  %v900_v25 = vrot.slane %v892_v5, 4  ;;  %v905_v30 = vperm.slane %v899_v16, %v2605_v55 }
 0x162   : > { %v1007_v26 = vsel %vm872_vm2, 0, %v1006_v17  ;;  %v1032_v27 = vrot.slane %v1027_v19, 4  ;;  %v1035_v29 = vsel %vm872_vm2, 0, %v1034_v20  ;;  %v885_v37 = vsel %vm872_vm2, 0, %v884_v23 }
 0x163   : > { %v1060_v31 = vrot.slane %v1035_v29, 4  ;;  %v887_v32 = vsel %vm872_vm2, 0, %v886_v24  ;;  %v901_v33 = vsel %vm872_vm2, %v897_v53, %v900_v25  ;;  %v1036_v38 = vsel %vm872_vm2, %v1008_v11, %v1001_v10 }
 0x164   : > { %v909_v34 = vperm.slane %v901_v33, %v2605_v55  ;;  %v919_v35 = vrot.slane %v887_v32, 4  ;;  %v1033_v36 = vsel %vm872_vm2, 0, %v1032_v27  ;;  %v1042_v39 = vsel %vm872_vm2, %v1041_v21, %v1007_v26 }
 0x165   : > { %v1061_v40 = vsel %vm872_vm2, %v1060_v31, %v1033_v36  ;;  %v910_v41 = vrot.slane %v905_v30, 4  ;;  %v1046_v43 = vperm.slane %v1042_v39, %v2599_v28  ;;  %v1055_v44 = vsel %vm872_vm2, %v1034_v20, %v1027_v19  ;;  %v1093_v39 = vpop.permute.xlu2 %1092 }
 0x166   : > { %v912_v42 = vrot.slane %v909_v34, 4  ;;  %v914_v45 = vsel %vm872_vm2, %v886_v24, %v879_v9  ;;  %v1065_v46 = vperm.slane %v1061_v40, %v2599_v28  ;;  %v920_v47 = vsel %vm872_vm2, %v919_v35, %v885_v37 }
 0x167   : > { %v1040_v49 = vperm.slane %v1036_v38, %v2599_v28  ;;  %v1047_v50 = vrot.slane %v1046_v43, 4  ;;  %v924_v51 = vperm.slane %v920_v47, %v2599_v28  ;;  %v1059_v53 = vperm.slane %v1055_v44, %v2599_v28  ;;  %v1091_v43 = vpop.permute.xlu1 %1090 }
 0x168   : > { %v913_v48 = vsel %vm872_vm2, 0, %v912_v42  ;;  %v1066_v54 = vrot.slane %v1065_v46, 4  ;;  %v911_v56 = vsel %vm872_vm2, 0, %v910_v41  ;;  %v918_v58 = vperm.slane %v914_v45, %v2599_v28 }
 0x169   : > { %v938_v52 = vrot.slane %v913_v48, 4  ;;  %v1048_v57 = vsel %vm872_vm2, %v1047_v50, %v1040_v49  ;;  %v925_v59 = vrot.slane %v924_v51, 4  ;;  %v933_v1 = vsel %vm872_vm2, %v912_v42, %v905_v30  ;;  %v1089_v42 = vpop.permute.xlu0 %1088 }
 0x16a   : > { %v1052_v60 = vperm.slane %v1048_v57, %v2605_v55  ;;  %v1067_v61 = vsel %vm872_vm2, %v1066_v54, %v1059_v53  ;;  %v937_v12 = vperm.slane %v933_v1, %v2599_v28  ;;  %v1097_v40 = vshrl.u32 %v2594_v22, 16 }
 0x16b   : > { %v939_v62 = vsel %vm872_vm2, %v938_v52, %v911_v56  ;;  %v1071_v63 = vperm.slane %v1067_v61, %v2605_v55  ;;  %v926_v0 = vsel %vm872_vm2, %v925_v59, %v918_v58  ;;  %v1104_v41 = vshrl.u32 %v1093_v39, 16 }
 0x16c   : > { %v943_v2 = vperm.slane %v939_v62, %v2599_v28  ;;  %v1077_v4 = vshrl.u32 %v1052_v60, 16  ;;  %v1053_v5 = vrot.slane %v1052_v60, 4  ;;  %v930_v6 = vperm.slane %v926_v0, %v2605_v55 }
 0x16d   : > { %v1076_v7 = vpack.i.b16 %v1071_v63, %v1052_v60  ;;  %v1078_v8 = vshrl.u32 %v1071_v63, 16  ;;  %v1072_v9 = vrot.slane %v1071_v63, 4  ;;  %v1096_v44 = vpack.i.b16 %v1089_v42, %v2594_v22 }
 0x16e   : > { %v944_v10 = vrot.slane %v943_v2, 4  ;;  %v1054_v11 = vsel %vm872_vm2, 0, %v1053_v5  ;;  %v931_v21 = vrot.slane %v930_v6, 4  ;;  %v955_v31 = vshrl.u32 %v930_v6, 16 }
 0x16f   : > { %v1213_v13 = vsel %vm1208_vm3, %v1076_v7, 0  ;;  %v1079_v14 = vpack.i.b16 %v1078_v8, %v1077_v4  ;;  %v1073_v15 = vsel %vm872_vm2, 0, %v1072_v9  ;;  %v1083_v17 = vshrl.u32 %v1054_v11, 16 }
 0x170   : > { %1222 = vmatpush.bf16.xpose.msra.mxu3 %v1213_v13  ;;  %v1082_v16 = vpack.i.b16 %v1073_v15, %v1054_v11  ;;  %v1084_v18 = vshrl.u32 %v1073_v15, 16  ;;  %v945_v19 = vsel %vm872_vm2, %v944_v10, %v937_v12  ;;  %v932_v32 = vsel %vm872_vm2, 0, %v931_v21 }
 0x171   : > { %v1232_v20 = vsel %vm1208_vm3, %v1079_v14, 0  ;;  %v949_v23 = vperm.slane %v945_v19, %v2605_v55  ;;  %v961_v37 = vshrl.u32 %v932_v32, 16  ;;  %v1098_v45 = vshrl.u32 %v1089_v42, 16 }
 0x172   : > { %1241 = vmatpush.bf16.xpose.msra.mxu0 %v1232_v20  ;;  %v1251_v24 = vsel %vm1208_vm3, %v1082_v16, 0  ;;  %v1085_v25 = vpack.i.b16 %v1084_v18, %v1083_v17  ;;  %v1102_v46 = vpack.i.b16 %v1093_v39, %v1091_v43  ;;  %v1103_v47 = vshrl.u32 %v1091_v43, 16 }
 0x173   : > { %1260 = vmatpush.bf16.xpose.msra.mxu1 %v1251_v24  ;;  %v950_v26 = vrot.slane %v949_v23, 4  ;;  %v956_v27 = vshrl.u32 %v949_v23, 16  ;;  %v954_v30 = vpack.i.b16 %v949_v23, %v930_v6  ;;  %v1099_v48 = vpack.i.b16 %v1098_v45, %v1097_v40 }
 0x174   : > { %v1270_v29 = vsel %vm1208_vm3, %v1085_v25, 0  ;;  %v1110_v49 = vperm.slane %v1096_v44, %v2599_v28  ;;  %v1105_v50 = vpack.i.b16 %v1104_v41, %v1103_v47  ;;  %v1115_v51 = vperm.slane %v1102_v46, %v2599_v28 }
 0x175   : > { %1279 = vmatpush.bf16.xpose.msrb.mxu2 %v1270_v29  ;;  %v951_v33 = vsel %vm872_vm2, 0, %v950_v26  ;;  %v957_v35 = vpack.i.b16 %v956_v27, %v955_v31  ;;  %v1136_v53 = vperm.slane %v1099_v48, %v2599_v28 }
 0x176   : > { %v962_v34 = vshrl.u32 %v951_v33, 16  ;;  %v960_v36 = vpack.i.b16 %v951_v33, %v932_v32  ;;  %v1118_v52 = vrot.slane %v1110_v49, 4  ;;  %v1116_v54 = vrot.slane %v1115_v51, 4 }
 0x177   : > { %2052 = vmatmul.msk.bf16.vlgmr.msra.gmra.mxu3 %vm1208_vm3, %v954_v30  ;;  %v1141_v56 = vperm.slane %v1105_v50, %v2599_v28  ;;  %v1144_v57 = vrot.slane %v1136_v53, 4 }
 0x178   : > { %v963_v38 = vpack.i.b16 %v962_v34, %v961_v37  ;;  %v1117_v58 = vsel %vm872_vm2, %v1116_v54, %v1110_v49  ;;  %v1119_v22 = vsel %vm872_vm2, %v1115_v51, %v1118_v52 }
 0x179   : > { %2053 = vmatmul.msk.bf16.vlgmr.msra.gmra.mxu0 %vm1208_vm3, %v957_v35  ;;  %v1142_v59 = vrot.slane %v1141_v56, 4  ;;  %v1123_v60 = vperm.slane %v1117_v58, %v2605_v55  ;;  %v1127_v61 = vperm.slane %v1119_v22, %v2605_v55  ;;  %v1145_v63 = vsel %vm872_vm2, %v1141_v56, %v1144_v57 }
 0x17a   : > { %2054 = vmatmul.msk.bf16.vlgmr.msra.gmra.mxu1 %vm1208_vm3, %v960_v36  ;;  %v1153_v4 = vperm.slane %v1145_v63, %v2605_v55 }
 0x17b   : > { %v1143_v62 = vsel %vm872_vm2, %v1142_v59, %v1136_v53  ;;  %v1128_v0 = vrot.slane %v1123_v60, 4  ;;  %v1130_v1 = vrot.slane %v1127_v61, 4 }
 0x17c   : > { %2055 = vmatmul.msk.bf16.vlgmr.msrb.gmra.mxu2 %vm1208_vm3, %v963_v38  ;;  %v1149_v2 = vperm.slane %v1143_v62, %v2605_v55  ;;  %v1156_v8 = vrot.slane %v1153_v4, 4 }
 0x17d   : > { %v1129_v5 = vsel %vm872_vm2, 0, %v1128_v0  ;;  %v1131_v6 = vsel %vm872_vm2, 0, %v1130_v1  ;;  %v1158_v10 = vsel %vm872_vm2, %v1130_v1, %v1123_v60 }
 0x17e   : > { %v1154_v7 = vrot.slane %v1149_v2, 4  ;;  %v1163_v9 = vrot.slane %v1131_v6, 4  ;;  %v1157_v11 = vsel %vm872_vm2, 0, %v1156_v8  ;;  %v1177_v15 = vsel %vm872_vm2, %v1156_v8, %v1149_v2 }
 0x17f   : > { %v1182_v13 = vrot.slane %v1157_v11, 4  ;;  %v1162_v16 = vperm.slane %v1158_v10, %v2599_v28  ;;  %v1181_v20 = vperm.slane %v1177_v15, %v2599_v28 }
 0x180   : > { %v1155_v12 = vsel %vm872_vm2, 0, %v1154_v7  ;;  %v1164_v14 = vsel %vm872_vm2, %v1163_v9, %v1129_v5 }
 0x181   : > { %v1168_v17 = vperm.slane %v1164_v14, %v2599_v28  ;;  %v1183_v18 = vsel %vm872_vm2, %v1182_v13, %v1155_v12 }
 0x182   : > { %v1187_v21 = vperm.slane %v1183_v18, %v2599_v28 }
 0x183   : > { %v1169_v19 = vrot.slane %v1168_v17, 4 }
 0x184   : > { %v1188_v24 = vrot.slane %v1187_v21, 4 }
 0x185   : > { %v1170_v23 = vsel %vm872_vm2, %v1169_v19, %v1162_v16 }
 0x186   : > { %v1174_v25 = vperm.slane %v1170_v23, %v2605_v55  ;;  %v1189_v26 = vsel %vm872_vm2, %v1188_v24, %v1181_v20 }
 0x187   : > { %v1193_v27 = vperm.slane %v1189_v26, %v2605_v55 }
 0x188   : > { %v1199_v29 = vshrl.u32 %v1174_v25, 16  ;;  %v1175_v30 = vrot.slane %v1174_v25, 4 }
 0x189   : > { %v1198_v31 = vpack.i.b16 %v1193_v27, %v1174_v25  ;;  %v1200_v32 = vshrl.u32 %v1193_v27, 16  ;;  %v1194_v34 = vrot.slane %v1193_v27, 4 }
 0x18a   : > { %v1176_v33 = vsel %vm872_vm2, 0, %v1175_v30 }
 0x18b   : > { %v1205_v35 = vshrl.u32 %v1176_v33, 16  ;;  %v1330_v36 = vsel %vm1328_vm4, %v1198_v31, 0  ;;  %v1201_v37 = vpack.i.b16 %v1200_v32, %v1199_v29  ;;  %v1195_v38 = vsel %vm872_vm2, 0, %v1194_v34 }
 0x18c   : > { %1339 = vmatpush.bf16.msrb.mxu3 %v1330_v36  ;;  %v1204_v39 = vpack.i.b16 %v1195_v38, %v1176_v33  ;;  %v1206_v40 = vshrl.u32 %v1195_v38, 16 }
 0x18d   : > { %v1349_v41 = vsel %vm1328_vm4, %v1201_v37, 0 }
 0x18e   : > { %1358 = vmatpush.bf16.msrb.mxu0 %v1349_v41  ;;  %v1368_v42 = vsel %vm1328_vm4, %v1204_v39, 0  ;;  %v1207_v43 = vpack.i.b16 %v1206_v40, %v1205_v35 }
 0x18f   : > { %1377 = vmatpush.bf16.msrb.mxu1 %v1368_v42 }
 0x190   : > { %v1387_v44 = vsel %vm1328_vm4, %v1207_v43, 0 }
 0x191   : > { %1396 = vmatpush.bf16.msra.mxu2 %v1387_v44 }
 0x1f6   : > { %v1243_v45 = vpop.f32.mrf.mxu0 }
 0x1f7   : > { %v1262_v46 = vpop.f32.mrf.mxu1  ;;  %v1288_v54 = vsel %vm1208_vm3, %v1243_v45, -inf }
 0x1f8   : > { %v1291_v47 = vsel %vm1208_vm3, %v1262_v46, -inf }
 0x1f9   : > { %1292 = vmax.xlane.f32.xlu2 %v1291_v47 }
 0x1fa   : > { %v1224_v48 = vpop.f32.mrf.mxu3 }
 0x1fb   : > { %v1285_v49 = vsel %vm1208_vm3, %v1224_v48, -inf }
 0x1fc   : > { %1286 = vmax.xlane.f32.xlu0 %v1285_v49 }
 0x1fe   : > { %v1245_v50 = vpop.f32.mrf.mxu0 }
 0x1ff   : > { %v1264_v51 = vpop.f32.mrf.mxu1  ;;  %v1281_v52 = vpop.f32.mrf.mxu2 }
 0x200   : > { %v1294_v53 = vsel %vm1208_vm3, %v1281_v52, -inf }
 0x201   : > { %1295 = vmax.xlane.f32.xlu1 %v1294_v53  ;;  %1289 = vmax.xlane.f32.xlu2 %v1288_v54 }
 0x202   : > { %v1226_v56 = vpop.f32.mrf.mxu3 }
 0x207   : > { %v1283_v57 = vpop.f32.mrf.mxu2 }
 0x26c   : > { %v1293_v58 = vpop.xlane.xlu2 %1292 }
 0x26d   : > { %v1299_v22 = vsub.f32 %v1262_v46, %v1293_v58 }
 0x26f   : > { %v1305_v59 = vmul.f32 1.442695, %v1299_v22  ;;  %v1287_v60 = vpop.xlane.xlu0 %1286 }
 0x270   : > { %v1297_v61 = vsub.f32 %v1224_v48, %v1287_v60 }
 0x271   : > { %2217 = vpow2.f32 %v1305_v59 }
 0x272   : > { %v1301_v62 = vmul.f32 1.442695, %v1297_v61 }
 0x274   : > { %2219 = vpow2.f32 %v1301_v62  ;;  %v1296_v63 = vpop.xlane.xlu1 %1295  ;;  %v1290_v0 = vpop.xlane.xlu2 %1289 }
 0x275   : > { %v1300_v1 = vsub.f32 %v1281_v52, %v1296_v63  ;;  %v1298_v2 = vsub.f32 %v1243_v45, %v1290_v0 }
 0x277   : > { %v2218_v4 = vpop.eup %2217  ;;  %v1307_v5 = vmul.f32 1.442695, %v1300_v1  ;;  %v1303_v6 = vmul.f32 1.442695, %v1298_v2 }
 0x278   : > { %v1323_v7 = vpack.c.bf16 %v2218_v4, %v2218_v4  ;;  %v1315_v8 = vsel %vm1208_vm3, %v2218_v4, 0.0 }
 0x279   : > { %2221 = vpow2.f32 %v1307_v5  ;;  %1316 = vadd.xlane.f32.xlu0 %v1315_v8 }
 0x27a   : > { %v2220_v9 = vpop.eup %2219  ;;  %2223 = vpow2.f32 %v1303_v6  ;;  %2058 = vmatmul.msk.bf16.vlgmr.msrb.gmra.mxu1 %vm1208_vm3, %v1323_v7 }
 0x27b   : > { %v1309_v10 = vsel %vm1208_vm3, %v2220_v9, 0.0  ;;  %v1321_v11 = vpack.c.bf16 %v2220_v9, %v2220_v9 }
 0x27c   : > { %1310 = vadd.xlane.f32.xlu1 %v1309_v10 }
 0x27d   : > { %2056 = vmatmul.msk.bf16.vlgmr.msrb.gmra.mxu3 %vm1208_vm3, %v1321_v11 }
 0x27f   : > { %v2222_v12 = vpop.eup %2221 }
 0x280   : > { %v2224_v13 = vpop.eup %2223  ;;  %v1324_v14 = vpack.c.bf16 %v2222_v12, %v2222_v12  ;;  %v1318_v15 = vsel %vm1208_vm3, %v2222_v12, 0.0 }
 0x281   : > { %1319 = vadd.xlane.f32.xlu2 %v1318_v15  ;;  %v1312_v16 = vsel %vm1208_vm3, %v2224_v13, 0.0  ;;  %v1322_v17 = vpack.c.bf16 %v2224_v13, %v2224_v13 }
 0x282   : > { %1313 = vadd.xlane.f32.xlu0 %v1312_v16  ;;  %2059 = vmatmul.msk.bf16.vlgmr.msra.gmra.mxu2 %vm1208_vm3, %v1324_v14 }
 0x283   : > { %2057 = vmatmul.msk.bf16.vlgmr.msrb.gmra.mxu0 %vm1208_vm3, %v1322_v17 }
 0x2ec   : > { %v1317_v18 = vpop.xlane.xlu0 %1316 }
 0x2ed   : > { %2225 = vrcp.f32 %v1317_v18 }
 0x2ef   : > { %v1311_v19 = vpop.xlane.xlu1 %1310 }
 0x2f0   : > { %2227 = vrcp.f32 %v1311_v19 }
 0x2f3   : > { %v2226_v24 = vpop.eup %2225 }
 0x2f4   : > { %v1320_v23 = vpop.xlane.xlu2 %1319 }
 0x2f5   : > { %v1314_v21 = vpop.xlane.xlu0 %1313 }
 0x2f6   : > { %2229 = vrcp.f32 %v1314_v21  ;;  %v2228_v27 = vpop.eup %2227 }
 0x2f7   : > { %v1379_v20 = vpop.f32.mrf.mxu1  ;;  %2231 = vrcp.f32 %v1320_v23 }
 0x2f8   : > { %v1408_v25 = vmul.f32 %v2226_v24, %v1379_v20 }
 0x2fa   : > { %v1410_v33 = vrot.slane %v1408_v25, 4 }
 0x2fc   : > { %v2230_v31 = vpop.eup %2229 }
 0x2fd   : > { %v2232_v37 = vpop.eup %2231 }
 0x2ff   : > { %v1381_v26 = vpop.f32.mrf.mxu1 }
 0x300   : > { %v1360_v29 = vpop.f32.mrf.mxu0  ;;  %v1341_v30 = vpop.f32.mrf.mxu3 }
 0x301   : > { %v1406_v32 = vmul.f32 %v2228_v27, %v1341_v30  ;;  %v1407_v34 = vmul.f32 %v2230_v31, %v1360_v29 }
 0x303   : > { %v1413_v35 = vrot.slane %v1406_v32, 4  ;;  %v1412_v36 = vsel %vm872_vm2, %v1410_v33, %v1406_v32  ;;  %v1425_v40 = vrot.slane %v1407_v34, 4 }
 0x304   : > { %v1418_v43 = vperm.slane %v1412_v36, %v2599_v28 }
 0x305   : > { %v1414_v38 = vsel %vm872_vm2, %v1408_v25, %v1413_v35  ;;  %v1398_v39 = vpop.f32.mrf.mxu2 }
 0x306   : > { %v1422_v41 = vperm.slane %v1414_v38, %v2599_v28  ;;  %v1409_v42 = vmul.f32 %v2232_v37, %v1398_v39  ;;  %v1437_v51 = vrot.slane %v1418_v43, 4 }
 0x308   : > { %v1449_v44 = vrot.slane %v1422_v41, 4  ;;  %v1423_v45 = vrot.slane %v1409_v42, 4  ;;  %v1426_v46 = vsel %vm872_vm2, %v1409_v42, %v1425_v40  ;;  %v1362_v47 = vpop.f32.mrf.mxu0  ;;  %v1343_v48 = vpop.f32.mrf.mxu3 }
 0x309   : > { %v1434_v49 = vperm.slane %v1426_v46, %v2599_v28  ;;  %v2345_v47 = vmov 32.0  }
 0x30a   : > { %v1424_v50 = vsel %vm872_vm2, %v1423_v45, %v1407_v34  ;;  %2233 = vrcp.f32 %v2345_v47 }
 0x30b   : > { %v1430_v52 = vperm.slane %v1424_v50, %v2599_v28  ;;  %v1447_v53 = vrot.slane %v1434_v49, 4  ;;  %v1450_v54 = vsel %vm872_vm2, %v1434_v49, %v1449_v44 }
 0x30c   : > { %v1458_v56 = vperm.slane %v1450_v54, %v2605_v55 }
 0x30d   : > { %v1435_v57 = vrot.slane %v1430_v52, 4  ;;  %v1438_v58 = vsel %vm872_vm2, %v1430_v52, %v1437_v51  ;;  %v1448_v22 = vsel %vm872_vm2, %v1447_v53, %v1422_v41  ;;  %v1400_v59 = vpop.f32.mrf.mxu2 }
 0x30e   : > { %v1446_v60 = vperm.slane %v1438_v58, %v2605_v55  ;;  %v1454_v61 = vperm.slane %v1448_v22, %v2605_v55  ;;  %v1465_v62 = vrot.slane %v1458_v56, 4  ;;  %v2119_v22 = vld [vmem:[%s2544_s14 + $0x8] sm:$0xff]  ;;  %v2118_v59 = vld [vmem:[%s2544_s14] sm:$0xff] }
 0x30f   : > { %v1436_v63 = vsel %vm872_vm2, %v1435_v57, %v1418_v43  ;;  %1608 = vmatpush.bf16.msra.mxu3 %v2119_v22 }
 0x310   : > { %v1442_v0 = vperm.slane %v1436_v63, %v2605_v55  ;;  %v1461_v1 = vrot.slane %v1446_v60, 4  ;;  %v1463_v2 = vrot.slane %v1454_v61, 4  ;;  %v1466_v4 = vsel %vm872_vm2, 0.0, %v1465_v62  ;;  %v2234_v48 = vpop.eup %2233 }
 0x311   : > { %v1478_v5 = vsel %vm872_vm2, %v1465_v62, %v1454_v61  ;;  %v1483_v6 = vrot.slane %v1466_v4, 4  ;;  %v1545_v49 = vmul.f32 32.0, %v2234_v48  ;;  %vm1549_vm7 = vweird.f32 %v2234_v48 }
 0x312   : > { %v1462_v7 = vsel %vm872_vm2, 0.0, %v1461_v1  ;;  %v1459_v8 = vrot.slane %v1442_v0, 4  ;;  %v1464_v9 = vsel %vm872_vm2, 0.0, %v1463_v2  ;;  %v1467_v10 = vsel %vm872_vm2, %v1461_v1, %v1442_v0 }
 0x313   : > { %v1472_v11 = vrot.slane %v1462_v7, 4  ;;  %v1471_v12 = vperm.slane %v1467_v10, %v2599_v28  ;;  %v1482_v13 = vperm.slane %v1478_v5, %v2599_v28  ;;  %v1484_v14 = vsel %vm872_vm2, %v1483_v6, %v1464_v9  ;;  %1609 = vmatpush.bf16.msra.mxu3 %v2118_v59  ;;  %v2211_v6 = vld [vmem:[%s2940_s5] ss:$0 sm:$0xff] }
 0x314   : > { %v1460_v15 = vsel %vm872_vm2, 0.0, %v1459_v8  ;;  %v1488_v16 = vperm.slane %v1484_v14, %v2599_v28  ;;  %v1546_v50 = vsub.f32 1.0, %v1545_v49  ;;  %v2212_v8 = vld [vmem:[%s2942_s16] ss:$0 sm:$0xff] }
 0x315   : > { %v1473_v17 = vsel %vm872_vm2, %v1472_v11, %v1460_v15  ;;  %v1491_v18 = vrot.slane %v1471_v12, 4  ;;  %v1503_v19 = vrot.slane %v1482_v13, 4  ;;  %v2213_v14 = vld [vmem:[%s713_s29] ss:$0 sm:$0xff]  ;;  %v2126_v15 = vld [vmem:[%s2558_s7 + $0x30] sm:$0xff] }
 0x316   : > { %v1477_v20 = vperm.slane %v1473_v17, %v2599_v28  ;;  %v1501_v21 = vrot.slane %v1488_v16, 4  ;;  %v1547_v51 = vmul.f32 %v2234_v48, %v1546_v50 }
 0x317   : > { %v1504_v23 = vsel %vm872_vm2, %v1488_v16, %v1503_v19  ;;  %v2125_v19 = vld [vmem:[%s2558_s7 + $0x28] sm:$0xff] }
 0x318   : > { %v1492_v24 = vsel %vm872_vm2, %v1477_v20, %v1491_v18  ;;  %v1512_v25 = vperm.slane %v1504_v23, %v2605_v55  ;;  %v1489_v26 = vrot.slane %v1477_v20, 4  ;;  %v1502_v27 = vsel %vm872_vm2, %v1501_v21, %v1482_v13  ;;  %v2127_v13 = vld [vmem:[%s2558_s7 + $0x38] sm:$0xff]  ;;  %v2124_v23 = vld [vmem:[%s2558_s7 + $0x20] sm:$0xff] }
 0x319   : > { %v1500_v29 = vperm.slane %v1492_v24, %v2605_v55  ;;  %v1508_v30 = vperm.slane %v1502_v27, %v2605_v55  ;;  %v1548_v52 = vadd.f32 %v2234_v48, %v1547_v51  ;;  %1728 = vmatpush.bf16.msra.mxu0 %v2127_v13 }
 0x31a   : > { %v1517_v31 = vrot.slane %v1512_v25, 4  ;;  %v1490_v32 = vsel %vm872_vm2, %v1489_v26, %v1471_v12 }
 0x31b   : > { %v1519_v33 = vrot.slane %v1500_v29, 4  ;;  %v1496_v28 = vperm.slane %v1490_v32, %v2605_v55  ;;  %v1513_v34 = vrot.slane %v1508_v30, 4  ;;  %v2762_v53 = vsel %vm1549_vm7, %v2234_v48, %v1548_v52 }
 0x31c   : > { %v1518_v35 = vsel %vm872_vm2, %v1517_v31, %v1500_v29 }
 0x31d   : > { %1526 = vrot.lane.b32.xlu2 %v1518_v35, %s2342_s19  ;;  %v1520_v36 = vsel %vm872_vm2, %v1512_v25, %v1519_v33  ;;  %v1515_v37 = vrot.slane %v1496_v28, 4  ;;  %v1514_v38 = vsel %vm872_vm2, %v1513_v34, %v1496_v28  ;;  %1729 = vmatpush.bf16.msra.mxu0 %v2126_v15  ;;  %v2122_v28 = vld [vmem:[%s2558_s7 + $0x10] sm:$0xff]  ;;  %s2945_s19 = sld [smem:[#allocation9_spill]] }
 0x31e   : > { %1530 = vrot.lane.b32.xlu0 %v1520_v36, %s2343_s21 }
 0x31f   : > { %v1516_v39 = vsel %vm872_vm2, %v1508_v30, %v1515_v37  ;;  %v2123_v30 = vld [vmem:[%s2558_s7 + $0x18] sm:$0xff]  ;;  %v2121_v37 = vld [vmem:[%s2558_s7 + $0x8] sm:$0xff] }
 0x320   : > { %1522 = vrot.lane.b32.xlu1 %v1516_v39, %s2344_s24 }
 0x321   : > { %1730 = vmatpush.bf16.msra.mxu0 %v2125_v19 }
 0x323   : > { %p2102_p1 = scmp.ne.s32.totalorder %s2945_s19, 1 }
 0x325   : > { %1731 = vmatpush.bf16.msra.mxu0 %v2124_v23  ;;  %v2215_v23 = vld [vmem:[%s724_s3] ss:$0 sm:$0xff] }
 0x329   : > { %1732 = vmatpush.bf16.msra.mxu0 %v2123_v30 }
 0x32d   : > { %1733 = vmatpush.bf16.msra.mxu0 %v2122_v28 }
 0x331   : > { %1734 = vmatpush.bf16.msra.mxu0 %v2121_v37 }
 0x377   : > { %v1527_v55 = vpop.permute.xlu2 %1526 }
 0x390   : > { %v1531_v42 = vpop.permute.xlu0 %1530 }
 0x392   : > { %v1523_v40 = vpop.permute.xlu1 %1522 }
 0x393   : > { %v1533_v41 = vsel %vm1208_vm3, %v1514_v38, %v1523_v40  ;;  %v2120_v40 = vld [vmem:[%s2558_s7] sm:$0xff] }
 0x394   : > { %v1535_v43 = vsel %vm1534_vm5, %v1533_v41, %v1527_v55  ;;  %1735 = vmatpush.bf16.msra.mxu0 %v2120_v40 }
 0x395   : > { %v1537_v44 = vsel %vm1536_vm6, %v1535_v43, %v1531_v42 }
 0x396   : > { %v1538_v45 = vadd.f32 %v1537_v44, %v2570_v3 }
 0x398   : > { %v1541_v46 = vsel %vm758_vm1, %v1538_v45, 0.0 }
 0x399   : > { %1542 = vadd.xlane.f32.xlu1 %v1541_v46 }
 0x40c   : > { %v1543_v54 = vpop.xlane.xlu1 %1542 }
 0x40d   : > { %v1551_v56 = vmul.f32 %v2762_v53, %v1543_v54 }
 0x40f   : > { %v1552_v57 = vsub.f32 %v1538_v45, %v1551_v56 }
 0x411   : > { %v1553_v3 = vmul.f32 %v1552_v57, %v1552_v57 }
 0x413   : > { %v1554_v58 = vsel %vm758_vm1, %v1553_v3, 0.0 }
 0x414   : > { %1555 = vadd.xlane.f32.xlu0 %v1554_v58 }
 0x487   : > { %v1556_v60 = vpop.xlane.xlu0 %1555 }
 0x488   : > { %v1557_v61 = vmul.f32 %v1556_v60, %v2762_v53 }
 0x48a   : > { %v1558_v62 = vadd.f32 1e-05, %v1557_v61 }
 0x48c   : > { %2235 = vrsqrt.f32 %v1558_v62  ;;  %vm1565_vm9 = vweird.f32 %v1558_v62 }
 0x492   : > { %v2236_v63 = vpop.eup %2235 }
 0x493   : > { %v1560_v0 = vmul.f32 %v2236_v63, %v1558_v62  ;;  %vm1566_vm8 = vweird.f32 %v2236_v63 }
 0x494   : > { %vm1567_vm10 = vmor %vm1565_vm9, %vm1566_vm8 }
 0x495   : > { %v1561_v1 = vmul.f32 %v2236_v63, %v1560_v0 }
 0x497   : > { %v1562_v2 = vmul.f32 0.5, %v1561_v1  ;;  %v2214_v1 = vld [vmem:[%s721_s1] ss:$0 sm:$0xff] }
 0x499   : > { %v1563_v4 = vsub.f32 1.5, %v1562_v2 }
 0x49b   : > { %v1564_v5 = vmul.f32 %v2236_v63, %v1563_v4 }
 0x49d   : > { %v1568_v7 = vsel %vm1567_vm10, %v2236_v63, %v1564_v5 }
 0x49e   : > { %v1569_v9 = vmul.f32 %v1568_v7, %v1552_v57 }
 0x4a0   : > { %v1573_v10 = vmul.f32 %v2211_v6, %v1569_v9 }
 0x4a2   : > { %v2779_v11 = vadd.f32 %v2212_v8, %v1573_v10 }
 0x4a4   : > { %v1578_v12 = vpack.c.bf16 %v2779_v11, %v2779_v11 }
 0x4a6   : > { %2068 = vmatmul.msk.bf16.vlgmr.msra.gmra.mxu3 %vm758_vm1, %v1578_v12 }
 0x529   : > { %v1611_v16 = vpop.f32.mrf.mxu3 }
 0x52a   : > { %v1612_v17 = vadd.f32 %v2213_v14, %v1611_v16 }
 0x52c   : > { %v1616_v18 = vmul.f32 0.70710677, %v1612_v17  ;;  %v1615_v61 = vmul.f32 0.5, %v1612_v17 }
 0x52e   : > { %v1617_v20 = vmul.f32 %v1616_v18, %v1616_v18 }
 0x530   : > { %v1618_v21 = vmin.f32 %v1617_v20, 16.0 }
 0x531   : > { %v1613_v24 = vpop.f32.mrf.mxu3 }
 0x532   : > { %v1619_v25 = vmul.f32 2.1237322e-06, %v1618_v21  ;;  %v1630_v26 = vmul.f32 3.8918573e-05, %v1618_v21 }
 0x534   : > { %v1620_v27 = vadd.f32 0.00028619796, %v1619_v25  ;;  %v1631_v29 = vadd.f32 0.001143296, %v1630_v26 }
 0x536   : > { %v1621_v31 = vmul.f32 %v1620_v27, %v1618_v21  ;;  %v1632_v32 = vmul.f32 %v1631_v29, %v1618_v21 }
 0x538   : > { %v1633_v33 = vadd.f32 0.014752088, %v1632_v32  ;;  %v1622_v34 = vadd.f32 0.0036580483, %v1621_v31 }
 0x53a   : > { %v1634_v35 = vmul.f32 %v1633_v33, %v1618_v21  ;;  %v1623_v38 = vmul.f32 %v1622_v34, %v1618_v21 }
 0x53c   : > { %v1635_v36 = vadd.f32 0.112945676, %v1634_v35  ;;  %v1624_v41 = vadd.f32 0.05243302, %v1623_v38 }
 0x53e   : > { %v1636_v39 = vmul.f32 %v1635_v36, %v1618_v21  ;;  %v1625_v44 = vmul.f32 %v1624_v41, %v1618_v21 }
 0x540   : > { %v1637_v55 = vadd.f32 0.4994258, %v1636_v39  ;;  %v1626_v45 = vadd.f32 0.18741608, %v1625_v44 }
 0x542   : > { %v1638_v42 = vmul.f32 %v1637_v55, %v1618_v21  ;;  %v1627_v47 = vmul.f32 %v1626_v45, %v1618_v21 }
 0x544   : > { %v1639_v43 = vadd.f32 1.0, %v1638_v42  ;;  %v1628_v51 = vadd.f32 1.1283791, %v1627_v47 }
 0x546   : > { %2237 = vrcp.f32 %v1639_v43  ;;  %v1651_v50 = vand.u32 2147483648, %v1639_v43  ;;  %v1649_v54 = vand.u32 2147483647, %v1639_v43  ;;  %vm1645_vm12 = vweird.f32 %v1639_v43 }
 0x547   : > { %v1629_v3 = vmul.f32 %v1628_v51, %v1616_v18 }
 0x548   : > { %v1652_v57 = vor.u32 1.1754944e-38, %v1651_v50  ;;  %vm1650_vm14 = vcmp.eq.f32.partialorder %v1649_v54, 8.507059e+37 }
 0x54c   : > { %v2238_v46 = vpop.eup %2237 }
 0x54d   : > { %v1641_v48 = vmul.f32 %v2238_v46, %v1639_v43  ;;  %vm1646_vm11 = vweird.f32 %v2238_v46 }
 0x54e   : > { %vm1647_vm13 = vmor %vm1645_vm12, %vm1646_vm11 }
 0x54f   : > { %v1642_v49 = vsub.f32 1.0, %v1641_v48 }
 0x551   : > { %v1643_v52 = vmul.f32 %v2238_v46, %v1642_v49 }
 0x553   : > { %v1644_v56 = vadd.f32 %v2238_v46, %v1643_v52 }
 0x555   : > { %v1648_v58 = vsel %vm1647_vm13, %v2238_v46, %v1644_v56 }
 0x556   : > { %v1653_v22 = vsel %vm1650_vm14, %v1652_v57, %v1648_v58 }
 0x557   : > { %v1654_v59 = vmul.f32 %v1653_v22, %v1629_v3 }
 0x559   : > { %v2069_v60 = vclamps-f32 %v1654_v59, 1.0 }
 0x55b   : > { %v1657_v62 = vadd.f32 1.0, %v2069_v60 }
 0x55d   : > { %v1658_v63 = vmul.f32 %v1657_v62, %v1615_v61 }
 0x55f   : > { %v1659_v0 = vpack.c.bf16 %v1658_v63, %v1658_v63 }
 0x561   : > { %1736 = vmatmul.bf16.vlgmr.msra.gmra.mxu0 %v1659_v0 }
 0x5de   : > { %v1737_v2 = vpop.f32.mrf.mxu0 }
 0x5df   : > { %v1738_v4 = vadd.f32 %v2214_v1, %v1737_v2 }
 0x5e1   : > { %v1741_v5 = vadd.f32 %v1738_v4, %v2779_v11 }
 0x5e3   : > { %v1744_v6 = vsel %vm758_vm1, %v1741_v5, 0.0 }
 0x5e4   : > { %1745 = vadd.xlane.f32.xlu2 %v1744_v6 }
 0x5e6   : > { %v1739_v7 = vpop.f32.mrf.mxu0 }
 0x657   : > { %v1746_v8 = vpop.xlane.xlu2 %1745 }
 0x658   : > { %v1747_v9 = vmul.f32 %v1746_v8, %v2762_v53 }
 0x65a   : > { %v1748_v10 = vsub.f32 %v1741_v5, %v1747_v9 }
 0x65c   : > { %v1749_v12 = vmul.f32 %v1748_v10, %v1748_v10 }
 0x65e   : > { %v1750_v13 = vsel %vm758_vm1, %v1749_v12, 0.0 }
 0x65f   : > { %1751 = vadd.xlane.f32.xlu1 %v1750_v13 }
 0x6d2   : > { %v1752_v14 = vpop.xlane.xlu1 %1751 }
 0x6d3   : > { %v1753_v15 = vmul.f32 %v1752_v14, %v2762_v53  ;;  %v2216_v53 = vld [vmem:[%s727_s8] ss:$0 sm:$0xff] }
 0x6d5   : > { %v1754_v16 = vadd.f32 1e-05, %v1753_v15 }
 0x6d7   : > { %2239 = vrsqrt.f32 %v1754_v16  ;;  %vm1761_vm0 = vweird.f32 %v1754_v16 }
 0x6dd   : > { %v2240_v11 = vpop.eup %2239 }
 0x6de   : > { %v1756_v17 = vmul.f32 %v2240_v11, %v1754_v16  ;;  %vm1762_vm15 = vweird.f32 %v2240_v11 }
 0x6df   : > { %vm1763_vm2 = vmor %vm1761_vm0, %vm1762_vm15 }
 0x6e0   : > { %v1757_v18 = vmul.f32 %v2240_v11, %v1756_v17 }
 0x6e2   : > { %v1758_v19 = vmul.f32 0.5, %v1757_v18 }
 0x6e4   : > { %v1759_v20 = vsub.f32 1.5, %v1758_v19 }
 0x6e6   : > { %v1760_v21 = vmul.f32 %v2240_v11, %v1759_v20 }
 0x6e8   : > { %v1764_v24 = vsel %vm1763_vm2, %v2240_v11, %v1760_v21 }
 0x6e9   : > { %v1765_v25 = vmul.f32 %v1764_v24, %v1748_v10 }
 0x6eb   : > { %v1769_v26 = vmul.f32 %v2215_v23, %v1765_v25  ;;  %1778 = sbr.rel (%p2102_p1) target bundleno = 1777 (0x6f1), region = 88 }
 0x6ed   : > { %v1773_v27 = vadd.f32 %v2216_v53, %v1769_v26 }
 0x6ef   : > { %1774 = vst.msk [vmem:[#allocation2] sm:$0xff] %vm758_vm1, %v1773_v27 }
 0x6f0   : > { %1779 = vst.msk [vmem:[%s671_s17] sm:$0xff] %vm758_vm1, %v1773_v27 }
 0x6f1 PF: > { %s2946_s3 = sld [smem:[#allocation10_spill]]  ;;  %s1793_s5 = sshll.u32 %s671_s17, 4  ;;  %s1794_s5 = int_to_ptr.vmem [resolvable:$true] %s1793_s5 }
 0x6f2   : > { %s2947_s21 = sld [smem:[#allocation7_spill]] }
 0x6f3   : > { %s2949_s14 = sld [smem:[#allocation29_spill]] }
 0x6f7   : > { %s2104_s13 = sshll.u32 %s2946_s3, 3 }
 0x6f8   : > { %s2950_s25 = sand.u32 1, %s2947_s21  }
 0x6f9   : > { %s1791_s26 = scalar_lea.hbm %s2949_s14, %s2104_s13  ;;  %s1781_s27 = scalar_lea.sflag [#allocation4], %s2950_s25 }
 0x6fa   : > { %s1795_s9 = sshll.u32 %s1791_s26, 4  ;;  %s2261_s29 = scalar_lea.hbm %s2949_s14, 16  ;;  %s1796_s9 = int_to_ptr.hbm [resolvable:$true] %s1795_s9 }
 0x6fb   : > { %s2255_s16 = sshra.s32 %s1796_s9, 4  ;;  %s2256_s16 = int_to_ptr.hbm [resolvable:$true] %s2255_s16 }
 0x6fc   : > { %s2257_s30 = scalar_lea.hbm %s2256_s16, 8  ;;  %p2262_p6 = scmp.lt.s32.totalorder %s2256_s16, %s2949_s14 }
 0x6fd   : > { %p2258_p2 = scmp.ne.s32.totalorder %s2256_s16, %s2257_s30  ;;  %p2263_p7 = scmp.lt.s32.totalorder %s2261_s29, %s2257_s30 }
 0x6ff   : > { %p2259_p4 = pnand %p2258_p2, %p2475_p3  ;;  %p2264_p8 = por %p2263_p7, %p2262_p6 }
 0x701   : > { %p2260_p5 = pneg %p2259_p4 }
 0x703   : > { %p2265_p10 = pnand %p2264_p8, %p2260_p5 }
 0x705   : > { %2268 = shalt.err (!%p2265_p10)
}
 0x706   : > { %2128 = dma.vmem_to_hbm [thread:$0]  (%p2475_p3), %s1794_s5, 128, %s1796_s9, %s1781_s27  }
 0x707 PF: > { %s2951_s23 = sld [smem:[#allocation13_spill]] }
 0x708   : > { %s2952_s17 = sld [smem:[#allocation6_spill]] }
 0x70d   : > { %p2134_p11 = scmp.ge.s32.totalorder %s2951_s23, 2 }
 0x70e   : > { %s1807_s28 = sand.u32 1, %s2952_s17  }
 0x70f   : > { %p2131_p12 = pnand %p2134_p11, %p2485_p9  ;;  %s1808_s11 = scalar_lea.sflag [#allocation4], %s1807_s28 }
 0x711   : > { %p2132_p13 = pneg %p2131_p12 }
 0x713   : > { %2302 = dma.done.wait (%p2132_p13), %s1808_s11, 128  }
 0x714   : > { %2304 = vsyncadd (%p2132_p13), %s1808_s11, 4294967168  ;;  %s28_s25 = sadd.s32 1, %s2951_s23   ;;  %s2954_s18 = sld [smem:[#allocation7_spill]] }
 0x715   : > { %p25_p0 = scmp.ge.s32.totalorder %s28_s25, 6   ;;  %s2955_s19 = sld [smem:[#allocation8_spill]] }
 0x716   : > { %s2956_s20 = sld [smem:[#allocation18_spill]] }
 0x717   : > { %s2957_s21 = sld [smem:[#allocation11_spill]]  ;;  %27 = sbr.rel (!%p25_p0) target bundleno = 17 (0x11), region = 165 }
 0x718   : > { %s2958_s22 = sld [smem:[#allocation12_spill]] }
 0x719   : > { %s2959_s23 = sld [smem:[#allocation14_spill]] }
 0x71a   : > { %s2960_s24 = sld [smem:[#allocation16_spill]] }
 0x71c   :  { %1814 = vsyncpa [#allocation4], 1 }
 0x71d   :  { %1816 = vsyncpa [#allocation4 + $0x1], 1 }

// kernel: tpu_custom_call.1
= control target key start
LH: loop header
LB: loop body
LE: loop exit
PB: predicated region body
PF: predicated region fallthrough
CT: control target
= control target key end

     0   :  { %s2285_s0 = inlined_call_operand.vmem [shape: f32[2,8,32], index: 0, kind: input, shape index: {}]   ;;  %s2286_s1 = inlined_call_operand.vmem [shape: bf16[2,32,32], index: 1, kind: input, shape index: {}]   ;;  %s2287_s2 = inlined_call_operand.vmem [shape: f32[2,1,32], index: 2, kind: input, shape index: {}]   ;;  %s2288_s3 = inlined_call_operand.vmem [shape: bf16[2,32,32], index: 3, kind: input, shape index: {}]   ;;  %s2289_s4 = inlined_call_operand.vmem [shape: f32[2,1,32], index: 4, kind: input, shape index: {}]   ;;  %s2290_s5 = inlined_call_operand.vmem [shape: bf16[2,32,32], index: 5, kind: input, shape index: {}]   ;;  %s2291_s6 = inlined_call_operand.vmem [shape: f32[2,1,32], index: 6, kind: input, shape index: {}]   ;;  %s2292_s7 = inlined_call_operand.vmem [shape: f32[2,1,32], index: 7, kind: input, shape index: {}]   ;;  %s2293_s8 = inlined_call_operand.vmem [shape: f32[2,1,32], index: 8, kind: input, shape index: {}]   ;;  %s2294_s9 = inlined_call_operand.vmem [shape: bf16[2,32,128], index: 9, kind: input, shape index: {}]   ;;  %s2295_s10 = inlined_call_operand.vmem [shape: f32[2,1,128], index: 10, kind: input, shape index: {}]   ;;  %s2296_s11 = inlined_call_operand.vmem [shape: bf16[2,128,32], index: 11, kind: input, shape index: {}]   ;;  %s2297_s12 = inlined_call_operand.vmem [shape: f32[2,1,32], index: 12, kind: input, shape index: {}]   ;;  %s2298_s13 = inlined_call_operand.vmem [shape: f32[2,1,32], index: 13, kind: input, shape index: {}]   ;;  %s2299_s14 = inlined_call_operand.vmem [shape: f32[2,1,32], index: 14, kind: input, shape index: {}]   ;;  %s2300_s15 = inlined_call_operand.hbm [shape: f32[2,8,32], index: 15, kind: output, shape index: {}]  }
   0x1   :  { %2316 = sst [smem:[#allocation20_spill]] %s2285_s0 }
   0x2   :  { %2317 = sst [smem:[#allocation21_spill]] %s2286_s1 }
   0x3   :  { %2318 = sst [smem:[#allocation22_spill]] %s2288_s3 }
   0x4   :  { %2319 = sst [smem:[#allocation23_spill]] %s2290_s5 }
   0x5   :  { %2320 = sst [smem:[#allocation24_spill]] %s2292_s7 }
   0x6   :  { %2321 = sst [smem:[#allocation25_spill]] %s2293_s8 }
   0x7   :  { %2322 = sst [smem:[#allocation26_spill]] %s2294_s9 }
   0x8   :  { %2323 = sst [smem:[#allocation27_spill]] %s2296_s11 }
   0x9   :  { %2324 = sst [smem:[#allocation28_spill]] %s2298_s13 }
   0xa   :  { %2325 = sst [smem:[#allocation29_spill]] %s2299_s14 }
   0xb   :  { %2326 = sst [smem:[#allocation30_spill]] %s2300_s15 }
   0xc   :  { %20 = vsyncpa [#allocation5], 0 }
   0xd   :  { %22 = vsyncpa [#allocation5 + $0x1], 0  ;;  %s1971_s18 = smov 0   ;;  %s1973_s19 = smov 0  }
   0xe   :  { %s1975_s20 = smov 0   ;;  %s1977_s21 = smov 0  }
   0xf   :  { %s1979_s22 = smov 0   ;;  %s1981_s23 = smov 0  }
  0x10   :  { %s1983_s24 = smov 0   ;;  %s1985_s25 = smov 0  }
  0x11 LB: > { %2327 = sst [smem:[#allocation7_spill]] %s1854_s18  ;;  %s1556_s26 = sadd.s32 4294967295, %s1882_s25   ;;  %s1882_s25 = sphi %s1985_s25, %s28_s25   ;;  %s1878_s24 = sphi %s1983_s24, %s2377_s24   ;;  %s1874_s23 = sphi %s1981_s23, %s2376_s23   ;;  %s1870_s22 = sphi %s1979_s22, %s2375_s22   ;;  %s1866_s21 = sphi %s1977_s21, %s2374_s21   ;;  %s1862_s20 = sphi %s1975_s20, %s2373_s20   ;;  %s1858_s19 = sphi %s1973_s19, %s2372_s19   ;;  %s1854_s18 = sphi %s1971_s18, %s2371_s18  }
  0x12   : > { %2328 = sst [smem:[#allocation8_spill]] %s1858_s19  ;;  %s1557_s27 = sadd.s32 4294967294, %s1882_s25  }
  0x13   : > { %2329 = sst [smem:[#allocation9_spill]] %s1862_s20  ;;  %s37_s28 = sadd.s32 1, %s1874_s23 }
  0x14   : > { %2330 = sst [smem:[#allocation10_spill]] %s1866_s21  ;;  %p38_p0 = scmp.ge.s32.totalorder %s37_s28, 2 }
  0x15   : > { %2331 = sst [smem:[#allocation11_spill]] %s1870_s22  ;;  %s40_s29 = sadd.s32 1, %s1878_s24 }
  0x16   : > { %2332 = sst [smem:[#allocation12_spill]] %s1874_s23  ;;  %p447_p1 = scmp.ne.s32.totalorder %s1862_s20, %s1858_s19 }
  0x17   : > { %2333 = sst [smem:[#allocation13_spill]] %s1878_s24  ;;  %p448_p2 = scmp.eq.s32.totalorder %s1556_s26, 3 }
  0x18   : > { %2334 = sst [smem:[#allocation14_spill]] %s1882_s25  ;;  %s2379_s28 = smov (%p38_p0, %s37_s28), 0 }
  0x19   : > { %2335 = sst [smem:[#allocation15_spill]] %s2379_s28  ;;  %s2381_s29 = smov (!%p38_p0, %s40_s29), %s1878_s24 }
  0x1a   : > { %p2020_p3 = por %p448_p2, %p447_p1  ;;  %p453_p4 = scmp.ne.s32.totalorder %s1858_s19, %s1854_s18 }
  0x1b   : > { %p42_p5 = scmp.ge.s32.totalorder %s2381_s29, 2  ;;  %p454_p6 = scmp.eq.s32.totalorder %s1557_s27, 3 }
  0x1c   : > { %s2336_s30 = scalar_select %p2020_p3, 1, 0 }
  0x1d   : > { %p1560_p7 = scmp.ge.s32.totalorder %s1882_s25, 1  ;;  %p573_p8 = scmp.lt.s32.totalorder %s1882_s25, 5 }
  0x1e   : > { %2337 = sst [smem:[#allocation16_spill]] %s2336_s30  ;;  %s2383_s29 = smov (%p42_p5, %s2381_s29), 0 }
  0x1f   : > { %2338 = sst [smem:[#allocation17_spill]] %s2383_s29  ;;  %p2030_p9 = por %p454_p6, %p453_p4 }
  0x20   : > { %p574_p10 = pnand %p1560_p7, %p573_p8  ;;  %s434_s17 = ssub.s32 %s1878_s24, %s2383_s29 }
  0x21   : > { %s2339_s16 = scalar_select %p2030_p9, 1, 0 }
  0x22   : > { %s437_s26 = sadd.s32 1, %s1862_s20  ;;  %p435_p11 = scmp.eq.s32.totalorder %s434_s17, 0 }
  0x23   : > { %2340 = sst [smem:[#allocation18_spill]] %s2339_s16  ;;  %577 = sbr.rel (%p574_p10) target bundleno = 1749 (0x6d5), region = 80 }
  0x24   : > { %s2038_s28 = scalar_select %p435_p11, %s1862_s20, %s437_s26  }
  0x25   : > { %s2305_s27 = sand.u32 (!%p574_p10), 1, %s1858_s19   ;;  %p672_p12 = scmp.lt.s32.totalorder (!%p574_p10), %s1870_s22, 1 }
  0x26   : > { %2341 = sst [smem:[#allocation19_spill]] %s2038_s28  ;;  %s2044_s23 = sshll.u32 (!%p574_p10), %s2305_s27, 3 }
  0x27   : > { %p676_p13 = scmp.lt.s32.totalorder (!%p574_p10), %s1866_s21, 1  ;;  %s2342_s0 = sld [smem:[#allocation20_spill]] (!%p574_p10) }
  0x28   : > { %s673_s16 = scalar_select %p672_p12, %s1870_s22, 1 }
  0x29   : > { %s2049_s18 = scalar_select %p676_p13, %s1866_s21, 1 }
  0x2a   : > { %s1562_s17 = sshll.u32 %s673_s16, 3  ;;  %s2343_s1 = sld [smem:[#allocation21_spill]] }
  0x2b   : > { %s1656_s24 = sshll.u32 %s2049_s18, 4  ;;  %s2344_s3 = sld [smem:[#allocation22_spill]] }
  0x2c   : > { %s2345_s5 = sld [smem:[#allocation23_spill]]  ;;  %s713_s29 = scalar_lea.vmem %s2295_s10, %s2049_s18 }
  0x2d   : > { %s675_s27 = scalar_lea.vmem %s2342_s0, %s1562_s17  ;;  %s2348_s9 = sld [smem:[#allocation26_spill]] }
  0x2e   : > { %s2349_s30 = sld [smem:[#allocation27_spill]]  ;;  %s671_s17 = scalar_lea.vmem [#allocation4], %s2044_s23 }
  0x2f   : > { %s2350_s22 = sld [smem:[#allocation28_spill]] }
  0x30   : > { %s680_s25 = scalar_lea.vmem %s2343_s1, %s1656_s24  ;;  %s721_s1 = scalar_lea.vmem %s2297_s12, %s2049_s18 }
  0x31   : > { %s688_s16 = scalar_lea.vmem %s2344_s3, %s1656_s24  ;;  %s2352_s26 = sld [smem:[#allocation10_spill]] }
  0x32   : > { %s2072_s0 = scalar_lea.vmem %s2345_s5, %s1656_s24  ;;  %s1660_s5 = sshll.u32 %s2049_s18, 6 }
  0x33   : > { %s2089_s14 = scalar_lea.vmem %s2348_s9, %s1656_s24  ;;  %s2351_s9 = sld [smem:[#allocation29_spill]] }
  0x34   : > { %s2103_s7 = scalar_lea.vmem %s2349_s30, %s1660_s5 }
  0x35   : > { %s724_s3 = scalar_lea.vmem %s2350_s22, %s2049_s18 }
  0x37   : > { %p1573_p0 = scmp.ne.s32.totalorder %s2352_s26, 0 }
  0x39   : > { %s727_s8 = scalar_lea.vmem %s2351_s9, %s2049_s18  ;;  %732 = sbr.rel (%p1573_p0) target bundleno = 64 (0x40), region = 84 }
  0x3e   : > { %v733_v0 = vld [vmem:[%s675_s27] sm:$0xff]  ;;  %vm734_vm0 = vcmask 261120  }
  0x3f   : > { %735 = vst.msk [vmem:[#allocation2] sm:$0xff] %vm734_vm0, %v733_v0 }
  0x40 PF: > { %v1662_v1 = vld [vmem:[%s680_s25 + $0x8] sm:$0xff]  ;;  %v1661_v2 = vld [vmem:[%s680_s25] sm:$0xff]  ;;  %vm758_vm1 = vcmask 261120   ;;  %s2353_s25 = scalar_lea.vmem %s2287_s2, %s2049_s18  ;;  %s1884_s27 = smov 120   ;;  %vm865_vm2 = vcmask 64512   ;;  %vm985_vm3 = vcmask 1043456  }
  0x41   : > { %768 = vmatpush.bf16.msra.mxu1 %v1662_v1  ;;  %v1664_v4 = vld [vmem:[%s688_s16 + $0x8] sm:$0xff]  ;;  %v1663_v6 = vld [vmem:[%s688_s16] sm:$0xff]  ;;  %s1885_s30 = smov 112   ;;  %s2354_s20 = scalar_lea.vmem %s2289_s4, %s2049_s18  ;;  %vm1072_vm4 = vcmask 130112   ;;  %vm1078_vm5 = vcmask 195712   ;;  %vm1084_vm6 = vcmask 261312  }
  0x42   : > { %v1755_v7 = vld [vmem:[%s2353_s25] ss:$0 sm:$0xff]  ;;  %s1886_s28 = smov 104   ;;  %v1666_v18 = vld [vmem:[%s2072_s0 + $0x8] sm:$0xff]  ;;  %s2355_s15 = scalar_lea.vmem %s2291_s6, %s2049_s18 }
  0x43   : > { %v1756_v12 = vld [vmem:[%s2354_s20] ss:$0 sm:$0xff]  ;;  %834 = vmatpush.bf16.msra.mxu2 %v1666_v18  ;;  %s1887_s19 = smov 24   ;;  %s1888_s21 = smov 16  }
  0x44   : > { %v1665_v19 = vld [vmem:[%s2072_s0] sm:$0xff]  ;;  %s1889_s24 = smov 8   ;;  %s2356_s26 = sld [smem:[#allocation24_spill]] }
  0x45   : > { %769 = vmatpush.bf16.msra.mxu1 %v1661_v2  ;;  %v1757_v31 = vld [vmem:[%s2355_s15] ss:$0 sm:$0xff] }
  0x46   : > { %v2115_v3 = vld [vmem:[#allocation2] sm:$0xff] }
  0x47   : > { %v737_v5 = vpack.c.bf16 %v2115_v3, %v2115_v3  ;;  %835 = vmatpush.bf16.msra.mxu2 %v1665_v19 }
  0x49   : > { %801 = vmatpush.bf16.msrb.mxu1 %v1664_v4 }
  0x4a   : > { %1582 = vmatmul.msk.bf16.vlgmr.msra.gmra.mxu1 %vm758_vm1, %v737_v5  ;;  %1600 = vmatmul.msk.bf16.vlgmr.msra.gmra.mxu2 %vm758_vm1, %v737_v5  ;;  %s2357_s5 = scalar_lea.vmem %s2356_s26, %s2049_s18 }
  0x4d   : > { %802 = vmatpush.bf16.msrb.mxu1 %v1663_v6 }
  0x5a   : > { %1591 = vmatmul.msk.bf16.vlgmr.msrb.gmra.mxu1 %vm758_vm1, %v737_v5 }
  0xc7   : > { %v771_v8 = vpop.f32.mrf.mxu1 }
  0xc8   : > { %v772_v9 = vadd.f32 %v1755_v7, %v771_v8 }
  0xca   : > { %v841_v10 = vpack.c.bf16 %v772_v9, %v772_v9 }
  0xcc   : > { %843 = vrot.lane.b32.xlu2 %v841_v10, %s1884_s27 }
  0xcd   : > { %v837_v32 = vpop.f32.mrf.mxu2 }
  0xce   : > { %v838_v33 = vadd.f32 %v1757_v31, %v837_v32 }
  0xcf   : > { %v773_v11 = vpop.f32.mrf.mxu1 }
  0xd0   : > { %v857_v34 = vpack.c.bf16 %v838_v33, %v838_v33 }
  0xd2   : > { %v987_v35 = vsel %vm985_vm3, %v857_v34, 0 }
  0xd4   : > { %845 = vrot.lane.b32.xlu2 %v841_v10, %s1885_s30 }
  0xd5   : > { %v839_v36 = vpop.f32.mrf.mxu2 }
  0xd7   : > { %v804_v13 = vpop.f32.mrf.mxu1 }
  0xd8   : > { %v805_v14 = vadd.f32 %v1756_v12, %v804_v13 }
  0xda   : > { %v849_v15 = vpack.c.bf16 %v805_v14, %v805_v14 }
  0xdc   : > { %851 = vrot.lane.b32.xlu1 %v849_v15, %s1884_s27  ;;  %855 = vrot.lane.b32.xlu0 %v849_v15, %s1886_s28  ;;  %v870_v16 = vsel %vm865_vm2, %v849_v15, 0 }
  0xdd   : > { %879 = vmatpush.bf16.xpose.msra.mxu3 %v870_v16 }
  0xdf   : > { %v806_v17 = vpop.f32.mrf.mxu1 }
  0xe4   : > { %853 = vrot.lane.b32.xlu1 %v849_v15, %s1885_s30  ;;  %847 = vrot.lane.b32.xlu0 %v841_v10, %s1886_s28 }
  0xe5   : > { %1601 = vmatmul.msk.bf16.vlgmr.msra.gmra.mxu3 %vm865_vm2, %v841_v10 }
  0xe6   : > { %996 = vmatpush.bf16.msrb.mxu3 %v987_v35 }
 0x126   : > { %v844_v24 = vpop.permute.xlu2 %843 }
 0x12e   : > { %v846_v28 = vpop.permute.xlu2 %845 }
 0x14e   : > { %v852_v20 = vpop.permute.xlu1 %851  ;;  %v856_v21 = vpop.permute.xlu0 %855 }
 0x14f   : > { %v889_v22 = vsel %vm865_vm2, %v852_v20, 0  ;;  %v927_v23 = vsel %vm865_vm2, %v856_v21, 0 }
 0x150   : > { %898 = vmatpush.bf16.xpose.msra.mxu0 %v889_v22  ;;  %936 = vmatpush.bf16.xpose.msrb.mxu2 %v927_v23 }
 0x156   : > { %v854_v25 = vpop.permute.xlu1 %853  ;;  %v848_v26 = vpop.permute.xlu0 %847 }
 0x157   : > { %v908_v27 = vsel %vm865_vm2, %v854_v25, 0  ;;  %1602 = vmatmul.msk.bf16.vlgmr.msra.gmra.mxu0 %vm865_vm2, %v844_v24  ;;  %1604 = vmatmul.msk.bf16.vlgmr.msrb.gmra.mxu2 %vm865_vm2, %v848_v26 }
 0x158   : > { %917 = vmatpush.bf16.xpose.msra.mxu1 %v908_v27 }
 0x15f   : > { %1603 = vmatmul.msk.bf16.vlgmr.msra.gmra.mxu1 %vm865_vm2, %v846_v28 }
 0x168   : > { %v2148_v29 = vpop.f32.mrf.mxu3 }
 0x169   : > { %v942_v46 = vsel %vm865_vm2, %v2148_v29, -inf }
 0x170   : > { %v883_v30 = vpop.f32.mrf.mxu3 }
 0x1d4   : > { %v900_v37 = vpop.f32.mrf.mxu0 }
 0x1d5   : > { %v945_v38 = vsel %vm865_vm2, %v900_v37, -inf }
 0x1d6   : > { %946 = vmax.xlane.f32.xlu1 %v945_v38 }
 0x1da   : > { %v938_v39 = vpop.f32.mrf.mxu2 }
 0x1db   : > { %v951_v40 = vsel %vm865_vm2, %v938_v39, -inf }
 0x1dc   : > { %v902_v41 = vpop.f32.mrf.mxu0  ;;  %v919_v42 = vpop.f32.mrf.mxu1  ;;  %952 = vmax.xlane.f32.xlu0 %v951_v40  ;;  %v1890_v40 = vmov 32.0  }
 0x1dd   : > { %v948_v43 = vsel %vm865_vm2, %v919_v42, -inf }
 0x1de   : > { %949 = vmax.xlane.f32.xlu2 %v948_v43 }
 0x1e2   : > { %v940_v44 = vpop.f32.mrf.mxu2 }
 0x1e4   : > { %v921_v45 = vpop.f32.mrf.mxu1 }
 0x1ef   : > { %861 = vrot.lane.b32.xlu1 %v857_v34, %s1885_s30 }
 0x1f0   : > { %859 = vrot.lane.b32.xlu0 %v857_v34, %s1884_s27  ;;  %s2358_s27 = sld [smem:[#allocation25_spill]] }
 0x1f6   : > { %863 = vrot.lane.b32.xlu2 %v857_v34, %s1886_s28  ;;  %s2359_s30 = scalar_lea.vmem %s2358_s27, %s2049_s18 }
 0x21a   : > { %943 = vmax.xlane.f32.xlu0 %v942_v46 }
 0x249   : > { %v947_v47 = vpop.xlane.xlu1 %946 }
 0x24a   : > { %v955_v48 = vsub.f32 %v900_v37, %v947_v47 }
 0x24c   : > { %v960_v49 = vmul.f32 1.442695, %v955_v48 }
 0x24e   : > { %1764 = vpow2.f32 %v960_v49 }
 0x24f   : > { %v953_v50 = vpop.xlane.xlu0 %952 }
 0x250   : > { %v957_v51 = vsub.f32 %v938_v39, %v953_v50 }
 0x251   : > { %v950_v52 = vpop.xlane.xlu2 %949 }
 0x252   : > { %v964_v53 = vmul.f32 1.442695, %v957_v51  ;;  %v956_v54 = vsub.f32 %v919_v42, %v950_v52  ;;  %v1668_v51 = vld [vmem:[%s2089_s14 + $0x8] sm:$0xff]  ;;  %v1667_v52 = vld [vmem:[%s2089_s14] sm:$0xff] }
 0x253   : > { %1157 = vmatpush.bf16.msra.mxu3 %v1668_v51 }
 0x254   : > { %v1765_v55 = vpop.eup %1764  ;;  %1766 = vpow2.f32 %v964_v53  ;;  %v962_v56 = vmul.f32 1.442695, %v956_v54 }
 0x255   : > { %v969_v57 = vsel %vm865_vm2, %v1765_v55, 0.0  ;;  %v979_v7 = vpack.c.bf16 %v1765_v55, %v1765_v55 }
 0x256   : > { %1768 = vpow2.f32 %v962_v56  ;;  %970 = vadd.xlane.f32.xlu2 %v969_v57 }
 0x257   : > { %1158 = vmatpush.bf16.msra.mxu3 %v1667_v52 }
 0x259   : > { %v864_v58 = vpop.permute.xlu2 %863 }
 0x25a   : > { %v1767_v59 = vpop.eup %1766  ;;  %v1044_v60 = vsel %vm985_vm3, %v864_v58, 0 }
 0x25b   : > { %v981_v61 = vpack.c.bf16 %v1767_v59, %v1767_v59  ;;  %1053 = vmatpush.bf16.msra.mxu2 %v1044_v60  ;;  %v975_v62 = vsel %vm865_vm2, %v1767_v59, 0.0 }
 0x25c   : > { %v1769_v63 = vpop.eup %1768  ;;  %976 = vadd.xlane.f32.xlu0 %v975_v62  ;;  %v1758_v62 = vld [vmem:[%s2357_s5] ss:$0 sm:$0xff] }
 0x25d   : > { %v972_v0 = vsel %vm865_vm2, %v1769_v63, 0.0  ;;  %v980_v6 = vpack.c.bf16 %v1769_v63, %v1769_v63 }
 0x25e   : > { %973 = vadd.xlane.f32.xlu1 %v972_v0  ;;  %1608 = vmatmul.msk.bf16.vlgmr.msra.gmra.mxu2 %vm865_vm2, %v981_v61  ;;  %v1759_v0 = vld [vmem:[%s2359_s30] ss:$0 sm:$0xff] }
 0x261   : > { %v862_v1 = vpop.permute.xlu1 %861 }
 0x262   : > { %v1025_v2 = vsel %vm985_vm3, %v862_v1, 0  ;;  %v860_v4 = vpop.permute.xlu0 %859 }
 0x263   : > { %1034 = vmatpush.bf16.msrb.mxu1 %v1025_v2  ;;  %v1006_v5 = vsel %vm985_vm3, %v860_v4, 0 }
 0x264   : > { %1015 = vmatpush.bf16.msrb.mxu0 %v1006_v5 }
 0x266   : > { %1607 = vmatmul.msk.bf16.vlgmr.msrb.gmra.mxu1 %vm865_vm2, %v980_v6  ;;  %v1676_v6 = vld [vmem:[%s2103_s7 + $0x38] sm:$0xff] }
 0x267   : > { %1606 = vmatmul.msk.bf16.vlgmr.msrb.gmra.mxu0 %vm865_vm2, %v979_v7  ;;  %v1675_v7 = vld [vmem:[%s2103_s7 + $0x30] sm:$0xff] }
 0x268   : > { %1277 = vmatpush.bf16.msra.mxu0 %v1676_v6 }
 0x26c   : > { %1278 = vmatpush.bf16.msra.mxu0 %v1675_v7 }
 0x28d   : > { %v944_v8 = vpop.xlane.xlu0 %943 }
 0x28e   : > { %v954_v9 = vsub.f32 %v2148_v29, %v944_v8  ;;  %v1760_v8 = vld [vmem:[%s713_s29] ss:$0 sm:$0xff] }
 0x290   : > { %v958_v10 = vmul.f32 1.442695, %v954_v9 }
 0x292   : > { %1770 = vpow2.f32 %v958_v10  ;;  %v1674_v10 = vld [vmem:[%s2103_s7 + $0x28] sm:$0xff] }
 0x293   : > { %1279 = vmatpush.bf16.msra.mxu0 %v1674_v10 }
 0x298   : > { %v1771_v11 = vpop.eup %1770 }
 0x299   : > { %v966_v12 = vsel %vm865_vm2, %v1771_v11, 0.0  ;;  %v978_v13 = vpack.c.bf16 %v1771_v11, %v1771_v11 }
 0x29a   : > { %967 = vadd.xlane.f32.xlu2 %v966_v12 }
 0x29b   : > { %1605 = vmatmul.msk.bf16.vlgmr.msrb.gmra.mxu3 %vm865_vm2, %v978_v13  ;;  %v1673_v13 = vld [vmem:[%s2103_s7 + $0x20] sm:$0xff] }
 0x29c   : > { %1280 = vmatpush.bf16.msra.mxu0 %v1673_v13 }
 0x2c9   : > { %v971_v16 = vpop.xlane.xlu2 %970 }
 0x2cf   : > { %v977_v14 = vpop.xlane.xlu0 %976 }
 0x2d0   : > { %1772 = vrcp.f32 %v977_v14 }
 0x2d1   : > { %v974_v15 = vpop.xlane.xlu1 %973 }
 0x2d2   : > { %1774 = vrcp.f32 %v974_v15 }
 0x2d3   : > { %1776 = vrcp.f32 %v971_v16 }
 0x2d6   : > { %v1773_v17 = vpop.eup %1772 }
 0x2d8   : > { %v1775_v20 = vpop.eup %1774 }
 0x2d9   : > { %v1777_v22 = vpop.eup %1776 }
 0x2e1   : > { %v1055_v18 = vpop.f32.mrf.mxu2 }
 0x2e2   : > { %v1066_v19 = vmul.f32 %v1773_v17, %v1055_v18  ;;  %v1672_v17 = vld [vmem:[%s2103_s7 + $0x18] sm:$0xff] }
 0x2e3   : > { %v1036_v21 = vpop.f32.mrf.mxu1  ;;  %1281 = vmatpush.bf16.msra.mxu0 %v1672_v17 }
 0x2e4   : > { %v1065_v23 = vmul.f32 %v1775_v20, %v1036_v21  ;;  %v1017_v24 = vpop.f32.mrf.mxu0  ;;  %1081 = vrot.lane.b32.xlu2 %v1066_v19, %s1887_s19  ;;  %s2362_s19 = sld [smem:[#allocation10_spill]] }
 0x2e5   : > { %v1064_v25 = vmul.f32 %v1777_v22, %v1017_v24  ;;  %v1671_v22 = vld [vmem:[%s2103_s7 + $0x10] sm:$0xff] }
 0x2e6   : > { %1075 = vrot.lane.b32.xlu0 %v1065_v23, %s1888_s21 }
 0x2e7   : > { %1069 = vrot.lane.b32.xlu1 %v1064_v25, %s1889_s24  ;;  %1282 = vmatpush.bf16.msra.mxu0 %v1671_v22 }
 0x2e9   : > { %v1057_v26 = vpop.f32.mrf.mxu2 }
 0x2ea   : > { %p1651_p1 = scmp.ne.s32.totalorder %s2362_s19, 1 }
 0x2eb   : > { %v1038_v27 = vpop.f32.mrf.mxu1 }
 0x2ec   : > { %v1019_v28 = vpop.f32.mrf.mxu0  ;;  %v1670_v27 = vld [vmem:[%s2103_s7 + $0x8] sm:$0xff] }
 0x2ed   : > { %1283 = vmatpush.bf16.msra.mxu0 %v1670_v27 }
 0x30d   : > { %v968_v29 = vpop.xlane.xlu2 %967 }
 0x30e   : > { %1778 = vrcp.f32 %v968_v29 }
 0x30f   : > { %1780 = vrcp.f32 %v1890_v40 }
 0x314   : > { %v1779_v30 = vpop.eup %1778 }
 0x315   : > { %v1781_v41 = vpop.eup %1780 }
 0x316   : > { %v1094_v42 = vmul.f32 32.0, %v1781_v41  ;;  %vm1098_vm7 = vweird.f32 %v1781_v41 }
 0x318   : > { %v1095_v43 = vsub.f32 1.0, %v1094_v42 }
 0x31a   : > { %v1096_v44 = vmul.f32 %v1781_v41, %v1095_v43 }
 0x31c   : > { %v1097_v45 = vadd.f32 %v1781_v41, %v1096_v44 }
 0x31e   : > { %v998_v31 = vpop.f32.mrf.mxu3  ;;  %v2179_v46 = vsel %vm1098_vm7, %v1781_v41, %v1097_v45 }
 0x31f   : > { %v1063_v32 = vmul.f32 %v1779_v30, %v998_v31  ;;  %v1669_v31 = vld [vmem:[%s2103_s7] sm:$0xff] }
 0x320   : > { %1284 = vmatpush.bf16.msra.mxu0 %v1669_v31 }
 0x321   : > { %1067 = vst.msk [vmem:[#allocation3] sm:$0xff] %vm865_vm2, %v1063_v32 }
 0x326   : > { %v1000_v33 = vpop.f32.mrf.mxu3 }
 0x33e   : > { %v1082_v36 = vpop.permute.xlu2 %1081 }
 0x358   : > { %v1076_v35 = vpop.permute.xlu0 %1075 }
 0x359   : > { %v1070_v34 = vpop.permute.xlu1 %1069 }
 0x35a   : > { %1073 = vst.msk [vmem:[#allocation3] sm:$0xff] %vm1072_vm4, %v1070_v34 }
 0x35b   : > { %1079 = vst.msk [vmem:[#allocation3] sm:$0xff] %vm1078_vm5, %v1076_v35 }
 0x35c   : > { %1085 = vst.msk [vmem:[#allocation3] sm:$0xff] %vm1084_vm6, %v1082_v36 }
 0x363   : > { %v1086_v37 = vld [vmem:[#allocation3] sm:$0xff] }
 0x364   : > { %v1087_v38 = vadd.f32 %v1086_v37, %v2115_v3 }
 0x366   : > { %v1090_v39 = vsel %vm758_vm1, %v1087_v38, 0.0 }
 0x367   : > { %1091 = vadd.xlane.f32.xlu0 %v1090_v39 }
 0x3da   : > { %v1092_v47 = vpop.xlane.xlu0 %1091 }
 0x3db   : > { %v1100_v48 = vmul.f32 %v2179_v46, %v1092_v47 }
 0x3dd   : > { %v1101_v49 = vsub.f32 %v1087_v38, %v1100_v48 }
 0x3df   : > { %v1102_v3 = vmul.f32 %v1101_v49, %v1101_v49 }
 0x3e1   : > { %v1103_v50 = vsel %vm758_vm1, %v1102_v3, 0.0 }
 0x3e2   : > { %1104 = vadd.xlane.f32.xlu1 %v1103_v50 }
 0x455   : > { %v1105_v53 = vpop.xlane.xlu1 %1104 }
 0x456   : > { %v1106_v54 = vmul.f32 %v1105_v53, %v2179_v46 }
 0x458   : > { %v1107_v55 = vadd.f32 1e-05, %v1106_v54 }
 0x45a   : > { %1782 = vrsqrt.f32 %v1107_v55  ;;  %vm1114_vm9 = vweird.f32 %v1107_v55 }
 0x460   : > { %v1783_v56 = vpop.eup %1782 }
 0x461   : > { %v1109_v57 = vmul.f32 %v1783_v56, %v1107_v55  ;;  %vm1115_vm8 = vweird.f32 %v1783_v56 }
 0x462   : > { %vm1116_vm10 = vmor %vm1114_vm9, %vm1115_vm8 }
 0x463   : > { %v1110_v58 = vmul.f32 %v1783_v56, %v1109_v57 }
 0x465   : > { %v1111_v59 = vmul.f32 0.5, %v1110_v58  ;;  %v1761_v58 = vld [vmem:[%s721_s1] ss:$0 sm:$0xff] }
 0x467   : > { %v1112_v60 = vsub.f32 1.5, %v1111_v59 }
 0x469   : > { %v1113_v61 = vmul.f32 %v1783_v56, %v1112_v60 }
 0x46b   : > { %v1117_v63 = vsel %vm1116_vm10, %v1783_v56, %v1113_v61 }
 0x46c   : > { %v1118_v1 = vmul.f32 %v1117_v63, %v1101_v49 }
 0x46e   : > { %v1122_v2 = vmul.f32 %v1758_v62, %v1118_v1 }
 0x470   : > { %v2196_v4 = vadd.f32 %v1759_v0, %v1122_v2 }
 0x472   : > { %v1127_v5 = vpack.c.bf16 %v2196_v4, %v2196_v4 }
 0x474   : > { %1617 = vmatmul.msk.bf16.vlgmr.msra.gmra.mxu3 %vm758_vm1, %v1127_v5 }
 0x4f7   : > { %v1160_v9 = vpop.f32.mrf.mxu3 }
 0x4f8   : > { %v1161_v11 = vadd.f32 %v1760_v8, %v1160_v9 }
 0x4fa   : > { %v1165_v12 = vmul.f32 0.70710677, %v1161_v11  ;;  %v1164_v54 = vmul.f32 0.5, %v1161_v11 }
 0x4fc   : > { %v1166_v14 = vmul.f32 %v1165_v12, %v1165_v12 }
 0x4fe   : > { %v1167_v15 = vmin.f32 %v1166_v14, 16.0 }
 0x4ff   : > { %v1162_v16 = vpop.f32.mrf.mxu3 }
 0x500   : > { %v1168_v18 = vmul.f32 2.1237322e-06, %v1167_v15  ;;  %v1179_v19 = vmul.f32 3.8918573e-05, %v1167_v15 }
 0x502   : > { %v1169_v20 = vadd.f32 0.00028619796, %v1168_v18  ;;  %v1180_v21 = vadd.f32 0.001143296, %v1179_v19 }
 0x504   : > { %v1170_v23 = vmul.f32 %v1169_v20, %v1167_v15  ;;  %v1181_v24 = vmul.f32 %v1180_v21, %v1167_v15 }
 0x506   : > { %v1182_v25 = vadd.f32 0.014752088, %v1181_v24  ;;  %v1171_v26 = vadd.f32 0.0036580483, %v1170_v23 }
 0x508   : > { %v1183_v28 = vmul.f32 %v1182_v25, %v1167_v15  ;;  %v1172_v30 = vmul.f32 %v1171_v26, %v1167_v15 }
 0x50a   : > { %v1184_v29 = vadd.f32 0.112945676, %v1183_v28  ;;  %v1173_v34 = vadd.f32 0.05243302, %v1172_v30 }
 0x50c   : > { %v1185_v32 = vmul.f32 %v1184_v29, %v1167_v15  ;;  %v1174_v37 = vmul.f32 %v1173_v34, %v1167_v15 }
 0x50e   : > { %v1186_v33 = vadd.f32 0.4994258, %v1185_v32  ;;  %v1175_v38 = vadd.f32 0.18741608, %v1174_v37 }
 0x510   : > { %v1187_v35 = vmul.f32 %v1186_v33, %v1167_v15  ;;  %v1176_v40 = vmul.f32 %v1175_v38, %v1167_v15  ;;  %v1762_v15 = vld [vmem:[%s724_s3] ss:$0 sm:$0xff] }
 0x512   : > { %v1188_v36 = vadd.f32 1.0, %v1187_v35  ;;  %v1177_v44 = vadd.f32 1.1283791, %v1176_v40 }
 0x514   : > { %1784 = vrcp.f32 %v1188_v36  ;;  %v1200_v43 = vand.u32 2147483648, %v1188_v36  ;;  %v1198_v47 = vand.u32 2147483647, %v1188_v36  ;;  %vm1194_vm12 = vweird.f32 %v1188_v36 }
 0x515   : > { %v1178_v3 = vmul.f32 %v1177_v44, %v1165_v12 }
 0x516   : > { %v1201_v49 = vor.u32 1.1754944e-38, %v1200_v43  ;;  %vm1199_vm14 = vcmp.eq.f32.partialorder %v1198_v47, 8.507059e+37 }
 0x51a   : > { %v1785_v39 = vpop.eup %1784 }
 0x51b   : > { %v1190_v41 = vmul.f32 %v1785_v39, %v1188_v36  ;;  %vm1195_vm11 = vweird.f32 %v1785_v39 }
 0x51c   : > { %vm1196_vm13 = vmor %vm1194_vm12, %vm1195_vm11 }
 0x51d   : > { %v1191_v42 = vsub.f32 1.0, %v1190_v41 }
 0x51f   : > { %v1192_v45 = vmul.f32 %v1785_v39, %v1191_v42 }
 0x521   : > { %v1193_v48 = vadd.f32 %v1785_v39, %v1192_v45 }
 0x523   : > { %v1197_v50 = vsel %vm1196_vm13, %v1785_v39, %v1193_v48 }
 0x524   : > { %v1202_v51 = vsel %vm1199_vm14, %v1201_v49, %v1197_v50 }
 0x525   : > { %v1203_v52 = vmul.f32 %v1202_v51, %v1178_v3 }
 0x527   : > { %v1618_v53 = vclamps-f32 %v1203_v52, 1.0 }
 0x529   : > { %v1206_v55 = vadd.f32 1.0, %v1618_v53 }
 0x52b   : > { %v1207_v56 = vmul.f32 %v1206_v55, %v1164_v54 }
 0x52d   : > { %v1208_v57 = vpack.c.bf16 %v1207_v56, %v1207_v56 }
 0x52f   : > { %1285 = vmatmul.bf16.vlgmr.msra.gmra.mxu0 %v1208_v57 }
 0x5ac   : > { %v1286_v59 = vpop.f32.mrf.mxu0 }
 0x5ad   : > { %v1287_v60 = vadd.f32 %v1761_v58, %v1286_v59 }
 0x5af   : > { %v1290_v61 = vadd.f32 %v1287_v60, %v2196_v4 }
 0x5b1   : > { %v1293_v62 = vsel %vm758_vm1, %v1290_v61, 0.0 }
 0x5b2   : > { %1294 = vadd.xlane.f32.xlu2 %v1293_v62 }
 0x5b4   : > { %v1288_v63 = vpop.f32.mrf.mxu0 }
 0x625   : > { %v1295_v0 = vpop.xlane.xlu2 %1294 }
 0x626   : > { %v1296_v1 = vmul.f32 %v1295_v0, %v2179_v46 }
 0x628   : > { %v1297_v2 = vsub.f32 %v1290_v61, %v1296_v1 }
 0x62a   : > { %v1298_v5 = vmul.f32 %v1297_v2, %v1297_v2 }
 0x62c   : > { %v1299_v6 = vsel %vm758_vm1, %v1298_v5, 0.0 }
 0x62d   : > { %1300 = vadd.xlane.f32.xlu0 %v1299_v6 }
 0x6a0   : > { %v1301_v7 = vpop.xlane.xlu0 %1300 }
 0x6a1   : > { %v1302_v8 = vmul.f32 %v1301_v7, %v2179_v46  ;;  %v1763_v46 = vld [vmem:[%s727_s8] ss:$0 sm:$0xff] }
 0x6a3   : > { %v1303_v9 = vadd.f32 1e-05, %v1302_v8 }
 0x6a5   : > { %1786 = vrsqrt.f32 %v1303_v9  ;;  %vm1310_vm0 = vweird.f32 %v1303_v9 }
 0x6ab   : > { %v1787_v4 = vpop.eup %1786 }
 0x6ac   : > { %v1305_v10 = vmul.f32 %v1787_v4, %v1303_v9  ;;  %vm1311_vm15 = vweird.f32 %v1787_v4 }
 0x6ad   : > { %vm1312_vm2 = vmor %vm1310_vm0, %vm1311_vm15 }
 0x6ae   : > { %v1306_v11 = vmul.f32 %v1787_v4, %v1305_v10 }
 0x6b0   : > { %v1307_v12 = vmul.f32 0.5, %v1306_v11 }
 0x6b2   : > { %v1308_v13 = vsub.f32 1.5, %v1307_v12 }
 0x6b4   : > { %v1309_v14 = vmul.f32 %v1787_v4, %v1308_v13 }
 0x6b6   : > { %v1313_v16 = vsel %vm1312_vm2, %v1787_v4, %v1309_v14 }
 0x6b7   : > { %v1314_v17 = vmul.f32 %v1313_v16, %v1297_v2 }
 0x6b9   : > { %v1318_v18 = vmul.f32 %v1762_v15, %v1314_v17  ;;  %1327 = sbr.rel (%p1651_p1) target bundleno = 1727 (0x6bf), region = 88 }
 0x6bb   : > { %v1322_v19 = vadd.f32 %v1763_v46, %v1318_v18 }
 0x6bd   : > { %1323 = vst.msk [vmem:[#allocation2] sm:$0xff] %vm758_vm1, %v1322_v19 }
 0x6be   : > { %1328 = vst.msk [vmem:[%s671_s17] sm:$0xff] %vm758_vm1, %v1322_v19 }
 0x6bf PF: > { %s2363_s3 = sld [smem:[#allocation11_spill]]  ;;  %s1342_s5 = sshll.u32 %s671_s17, 4  ;;  %s1343_s5 = int_to_ptr.vmem [resolvable:$true] %s1342_s5 }
 0x6c0   : > { %s2364_s21 = sld [smem:[#allocation8_spill]] }
 0x6c1   : > { %s2366_s14 = sld [smem:[#allocation30_spill]] }
 0x6c5   : > { %s1653_s13 = sshll.u32 %s2363_s3, 3 }
 0x6c6   : > { %s2367_s25 = sand.u32 1, %s2364_s21  }
 0x6c7   : > { %s1340_s26 = scalar_lea.hbm %s2366_s14, %s1653_s13  ;;  %s1330_s27 = scalar_lea.sflag [#allocation5], %s2367_s25 }
 0x6c8   : > { %s1344_s9 = sshll.u32 %s1340_s26, 4  ;;  %s1808_s29 = scalar_lea.hbm %s2366_s14, 16  ;;  %s1345_s9 = int_to_ptr.hbm [resolvable:$true] %s1344_s9 }
 0x6c9   : > { %s1802_s30 = sshra.s32 %s1345_s9, 4  ;;  %s1803_s30 = int_to_ptr.hbm [resolvable:$true] %s1802_s30 }
 0x6ca   : > { %s1804_s16 = scalar_lea.hbm %s1803_s30, 8  ;;  %p1809_p6 = scmp.lt.s32.totalorder %s1803_s30, %s2366_s14 }
 0x6cb   : > { %p1805_p2 = scmp.ne.s32.totalorder %s1803_s30, %s1804_s16  ;;  %p1810_p7 = scmp.lt.s32.totalorder %s1808_s29, %s1804_s16 }
 0x6cd   : > { %p1806_p4 = pnand %p1805_p2, %p2020_p3  ;;  %p1811_p8 = por %p1810_p7, %p1809_p6 }
 0x6cf   : > { %p1807_p5 = pneg %p1806_p4 }
 0x6d1   : > { %p1812_p10 = pnand %p1811_p8, %p1807_p5 }
 0x6d3   : > { %1815 = shalt.err (!%p1812_p10)
}
 0x6d4   : > { %1677 = dma.vmem_to_hbm [thread:$0]  (%p2020_p3), %s1343_s5, 128, %s1345_s9, %s1330_s27  }
 0x6d5 PF: > { %s2368_s23 = sld [smem:[#allocation14_spill]] }
 0x6d6   : > { %s2369_s17 = sld [smem:[#allocation7_spill]] }
 0x6db   : > { %p1683_p11 = scmp.ge.s32.totalorder %s2368_s23, 2 }
 0x6dc   : > { %s1356_s0 = sand.u32 1, %s2369_s17  }
 0x6dd   : > { %p1680_p12 = pnand %p1683_p11, %p2030_p9  ;;  %s1357_s11 = scalar_lea.sflag [#allocation5], %s1356_s0 }
 0x6df   : > { %p1681_p13 = pneg %p1680_p12 }
 0x6e1   : > { %1849 = dma.done.wait (%p1681_p13), %s1357_s11, 128  }
 0x6e2   : > { %1851 = vsyncadd (%p1681_p13), %s1357_s11, 4294967168  ;;  %s28_s25 = sadd.s32 1, %s2368_s23   ;;  %s2371_s18 = sld [smem:[#allocation8_spill]] }
 0x6e3   : > { %p25_p0 = scmp.ge.s32.totalorder %s28_s25, 6   ;;  %s2372_s19 = sld [smem:[#allocation9_spill]] }
 0x6e4   : > { %s2373_s20 = sld [smem:[#allocation19_spill]] }
 0x6e5   : > { %s2374_s21 = sld [smem:[#allocation12_spill]]  ;;  %27 = sbr.rel (!%p25_p0) target bundleno = 17 (0x11), region = 165 }
 0x6e6   : > { %s2375_s22 = sld [smem:[#allocation13_spill]] }
 0x6e7   : > { %s2376_s23 = sld [smem:[#allocation15_spill]] }
 0x6e8   : > { %s2377_s24 = sld [smem:[#allocation17_spill]] }
 0x6ea   :  { %1363 = vsyncpa [#allocation5], 1 }
 0x6eb   :  { %1365 = vsyncpa [#allocation5 + $0x1], 1 }

</bundles_post_ra>
